<compile_context>
chip_gen: v7x
topology: tpu7x:2x2x1
jax: 0.10.0
libtpu: 0.0.40
codegen_flags: <defaults>
</compile_context>

<pallas_src>
import functools
import math

import numpy as np
import jax
import jax.numpy as jnp
from jax.experimental import pallas as pl
from jax.experimental.pallas import tpu as pltpu


def make_hyper_attention_kernel(L, N, d_k, d_out, alpha, block_b,
                                compute_dtype=jnp.float32, eps=1e-5):
    inv_temp = 1.0 / math.sqrt(float(d_k))
    f32 = jnp.float32

    def kernel(lq_ref, gq_ref, kv_ref, wq_ref, wg_ref, wkv_ref, ln_ref, out_ref):
        Bt = block_b
        mm = lambda x: x.astype(compute_dtype)   # bf16 knob (f32 default = no-op)

        # --- Weight-stationary fused projections (biases folded in via the trailing
        #     ones column).  M dims are Bt*L / Bt*2N / Bt rows; each RHS slab is a
        #     single resident 2D weight (no per-batch broadcast).
        proj_q = jnp.dot(mm(lq_ref[...]), mm(wq_ref[...]),
                         preferred_element_type=f32)            # (Bt*L, d_out+d_k)
        proj_kv = jnp.dot(mm(kv_ref[...]), mm(wkv_ref[...]),
                          preferred_element_type=f32)           # (Bt*2N, d_k+d_out)
        gq_proj = jnp.dot(mm(gq_ref[...]), mm(wg_ref[...]),
                          preferred_element_type=f32)           # (Bt, d_k)

        # Layout-free reshapes: per-instance row counts (L, 2N) are multiples of 8.
        proj_q = proj_q.reshape(Bt, L, d_out + d_k)
        proj_kv = proj_kv.reshape(Bt, 2 * N, d_k + d_out)

        residual = proj_q[:, :, :d_out]      # (Bt, L, d_out)  local_q @ w_res + b_res
        lqp = proj_q[:, :, d_out:]           # (Bt, L, d_k)    local_q @ w_ls  + b_ls
        kk = proj_kv[:, :N, :d_k]            # (Bt, N, d_k)    k @ w_ks + b_ks
        vv = proj_kv[:, N:, d_k:]            # (Bt, N, d_out)  v @ w_vs + b_vs

        # --- Local attention scores + EXACT softmax (no approx reciprocal).
        s_l = jnp.einsum('bqd,bkd->bqk', mm(lqp), mm(kk),
                         preferred_element_type=f32) * inv_temp       # (Bt, L, N)
        s_l = s_l - jnp.max(s_l, axis=-1, keepdims=True)
        e_l = jnp.exp(s_l)
        l_attn = e_l / jnp.sum(e_l, axis=-1, keepdims=True)

        # --- Global attention: one query row per instance, broadcast over the L rows
        #     (softmax commutes with the row-repeat in the reference).
        s_g = jnp.einsum('bqd,bkd->bqk', mm(gq_proj[:, None, :]), mm(kk),
                         preferred_element_type=f32) * inv_temp       # (Bt, 1, N)
        s_g = s_g - jnp.max(s_g, axis=-1, keepdims=True)
        e_g = jnp.exp(s_g)
        g_attn = e_g / jnp.sum(e_g, axis=-1, keepdims=True)

        attn = alpha * g_attn + (1.0 - alpha) * l_attn                # (Bt, L, N)

        # --- Attention output + residual + ReLU (dropout is identity in eval mode).
        out = jnp.einsum('bqk,bkd->bqd', mm(attn), mm(vv),
                         preferred_element_type=f32)                  # (Bt, L, d_out)
        out = jnp.maximum(out + residual, 0.0)

        # --- LayerNorm over d_out (biased variance, eps=1e-5), exact rsqrt, f32 math.
        mean = jnp.mean(out, axis=-1, keepdims=True)
        centered = out - mean
        var = jnp.mean(centered * centered, axis=-1, keepdims=True)
        normed = centered * jax.lax.rsqrt(var + eps)
        normed = normed * ln_ref[0:1, :] + ln_ref[1:2, :]             # (Bt, L, d_out)

        # --- Lane-dense store: one transpose + free reshape -> (L, Bt*d_out) tile
        #     (unmasked full-width vst); no per-b concat loop.
        out_ref[...] = jnp.transpose(normed, (1, 0, 2)).reshape(L, Bt * d_out)

    return kernel


def pack_params(params, d_in, d_global, d_k, d_out):
    """Pack the 12 small weight/bias arrays into 3 weight slabs + 1 LN slab.
    Called ONCE outside the hot path."""
    f32 = jnp.float32
    # w_q rows: [wres | wls] (d_in rows), [bres | bls] (1 bias row)
    w_q = jnp.zeros((d_in + 1, d_out + d_k), f32)
    w_q = w_q.at[:d_in, :d_out].set(params["wres"])
    w_q = w_q.at[:d_in, d_out:].set(params["wls"])
    w_q = w_q.at[d_in, :d_out].set(params["bres"])
    w_q = w_q.at[d_in, d_out:].set(params["bls"])

    # w_g rows: wgs (d_global rows), bgs (1 bias row)
    w_g = jnp.zeros((d_global + 1, d_k), f32)
    w_g = w_g.at[:d_global, :].set(params["wgs"])
    w_g = w_g.at[d_global, :].set(params["bgs"])

    # w_kv rows: [wks | wvs] (d_in rows), [bks | bvs] (1 bias row)
    w_kv = jnp.zeros((d_in + 1, d_k + d_out), f32)
    w_kv = w_kv.at[:d_in, :d_k].set(params["wks"])
    w_kv = w_kv.at[:d_in, d_k:].set(params["wvs"])
    w_kv = w_kv.at[d_in, :d_k].set(params["bks"])
    w_kv = w_kv.at[d_in, d_k:].set(params["bvs"])

    ln = jnp.stack([params["ln_g"], params["ln_b"]], axis=0)          # (2, d_out)
    return w_q, w_g, w_kv, ln


def hyper_attention_forward(global_q, local_q, k, v, w_q, w_g, w_kv, ln,
                            *, d_k, alpha, block_b, compute_dtype=jnp.float32):
    """Batched forward: global_q (B,1,d_global), local_q (B,L,d_in), k/v (B,N,d_in).
    Intended to be wrapped in jax.jit so the activation packing below fuses."""
    f32 = jnp.float32
    B, L, d_local = local_q.shape
    _, N, d_in = k.shape
    assert d_local == d_in, "module applies w_res (d_in) and w_ls (d_local) to local_q"
    d_global = global_q.shape[-1]
    d_out = w_q.shape[1] - d_k
    assert B % block_b == 0
    nb = B // block_b

    # --- Activation packing (fused under jit; trailing ones column carries the bias).
    lq_aug = jnp.concatenate(
        [local_q.astype(f32), jnp.ones((B, L, 1), f32)], axis=-1
    ).reshape(B * L, d_in + 1)                                        # (B*L, d_in+1)
    gq_aug = jnp.concatenate(
        [global_q[:, 0, :].astype(f32), jnp.ones((B, 1), f32)], axis=-1
    )                                                                 # (B, d_global+1)
    kv_aug = jnp.concatenate(
        [jnp.concatenate([k.astype(f32), v.astype(f32)], axis=1),
         jnp.ones((B, 2 * N, 1), f32)], axis=-1
    ).reshape(B * 2 * N, d_in + 1)                                    # (B*2N, d_in+1)

    kernel = make_hyper_attention_kernel(L, N, d_k, d_out, alpha, block_b, compute_dtype)
    out_packed = pl.pallas_call(
        kernel,
        out_shape=jax.ShapeDtypeStruct((L, B * d_out), f32),
        grid=(nb,),
        in_specs=[
            pl.BlockSpec((block_b * L, d_in + 1), lambda j: (j, 0)),
            pl.BlockSpec((block_b, d_global + 1), lambda j: (j, 0)),
            pl.BlockSpec((block_b * 2 * N, d_in + 1), lambda j: (j, 0)),
            pl.BlockSpec((d_in + 1, d_out + d_k), lambda j: (0, 0)),   # resident weight slab
            pl.BlockSpec((d_global + 1, d_k), lambda j: (0, 0)),       # resident weight slab
            pl.BlockSpec((d_in + 1, d_k + d_out), lambda j: (0, 0)),   # resident weight slab
            pl.BlockSpec((2, d_out), lambda j: (0, 0)),                # resident LN slab
        ],
        out_specs=pl.BlockSpec((L, block_b * d_out), lambda j: (0, j)),
        compiler_params=pltpu.CompilerParams(
            dimension_semantics=("parallel",),
            vmem_limit_bytes=32 * 1024 * 1024),
    )(lq_aug, gq_aug, kv_aug, w_q, w_g, w_kv, ln)

    # Layout plumbing only: (L, B*d_out) -> (B, L, d_out)
    return out_packed.reshape(L, B, d_out).transpose(1, 0, 2)


def reference_forward(global_q, local_q, k, v, params, *, d_k, alpha, eps=1e-5):
    inv_temp = 1.0 / math.sqrt(float(d_k))
    hp = jax.lax.Precision.HIGHEST

    def single(gq, lq, k_in, v_in):
        residual = jnp.dot(lq, params["wres"], precision=hp) + params["bres"]
        lqp = jnp.dot(lq, params["wls"], precision=hp) + params["bls"]
        kk = jnp.dot(k_in, params["wks"], precision=hp) + params["bks"]
        vv = jnp.dot(v_in, params["wvs"], precision=hp) + params["bvs"]
        gqp = jnp.dot(gq, params["wgs"], precision=hp) + params["bgs"]
        l_attn = jax.nn.softmax(jnp.dot(lqp, kk.T, precision=hp) * inv_temp, axis=-1)
        g_attn = jax.nn.softmax(jnp.dot(gqp, kk.T, precision=hp) * inv_temp, axis=-1)
        attn = alpha * g_attn + (1.0 - alpha) * l_attn
        out = jax.nn.relu(jnp.dot(attn, vv, precision=hp) + residual)
        mean = out.mean(-1, keepdims=True)
        var = ((out - mean) ** 2).mean(-1, keepdims=True)
        return (out - mean) / jnp.sqrt(var + eps) * params["ln_g"] + params["ln_b"]

    return jax.vmap(single)(global_q, local_q, k, v)


if __name__ == "__main__":
    # Small shapes consistent with the module.  The module requires d_in == d_local
    # (w_res and w_ls are both applied to local_q).
    d_in = d_local = 32
    d_global = 16
    d_k = 32
    d_out = 32
    L = 8           # len_lq (rows of local_q)
    N = 8           # number of keys / values
    B = 16          # independent HyperAttention instances batched into one pallas_call
    BLOCK_B = B // 2  # grid=(2,): both v7x TCs busy; on v5e/v6e BLOCK_B=B (1 step) also works
    alpha = 0.5

    key = jax.random.PRNGKey(0)
    ks = jax.random.split(key, 16)

    def normal_w(k_, shape, fan_sum):
        # mimics nn.init.normal_(std=sqrt(2/(fan_in+fan_out))); stored as [in, out]
        return jax.random.normal(k_, shape, jnp.float32) * np.sqrt(2.0 / fan_sum)

    params = {
        "wls":  normal_w(ks[0], (d_local, d_k), d_local + d_k),
        "bls":  jax.random.normal(ks[1], (d_k,), jnp.float32) * 0.01,
        "wks":  normal_w(ks[2], (d_in, d_k), d_in + d_k),
        "bks":  jax.random.normal(ks[3], (d_k,), jnp.float32) * 0.01,
        "wvs":  normal_w(ks[4], (d_in, d_out), d_in + d_out),
        "bvs":  jax.random.normal(ks[5], (d_out,), jnp.float32) * 0.01,
        "wres": normal_w(ks[6], (d_in, d_out), d_in + d_out),
        "bres": jax.random.normal(ks[7], (d_out,), jnp.float32) * 0.01,
        "wgs":  normal_w(ks[8], (d_global, d_k), d_global + d_k),
        "bgs":  jax.random.normal(ks[9], (d_k,), jnp.float32) * 0.01,
        "ln_g": jnp.ones((d_out,), jnp.float32),    # nn.LayerNorm default weight
        "ln_b": jnp.zeros((d_out,), jnp.float32),   # nn.LayerNorm default bias
    }

    global_q = jax.random.normal(ks[10], (B, 1, d_global), jnp.float32)
    local_q = jax.random.normal(ks[11], (B, L, d_local), jnp.float32)
    k_in = jax.random.normal(ks[12], (B, N, d_in), jnp.float32)
    v_in = jax.random.normal(ks[13], (B, N, d_in), jnp.float32)

    # Parameter packing hoisted out of the hot path; forward jitted so activation
    # packing / output reshape fuse around the single pallas_call.
    w_q, w_g, w_kv, ln = pack_params(params, d_in, d_global, d_k, d_out)
    fwd = jax.jit(functools.partial(hyper_attention_forward,
                                    d_k=d_k, alpha=alpha, block_b=BLOCK_B))

    out = fwd(global_q, local_q, k_in, v_in, w_q, w_g, w_kv, ln)
    out = jax.block_until_ready(out)

    ref = reference_forward(global_q, local_q, k_in, v_in, params, d_k=d_k, alpha=alpha)
    assert out.shape == (B, L, d_out)
    # Exact softmax division (no approx reciprocal) -> tolerance back to 1e-4.
    np.testing.assert_allclose(np.asarray(out), np.asarray(ref), rtol=1e-4, atol=1e-4)

    print("KERNEL_OK")
</pallas_src>

<mosaic_0001>
module attributes {stable_mosaic.version = 11 : i64} {
  func.func @kernel(%arg0: i32, %arg1: memref<64x33xf32, #tpu.memory_space<vmem>>, %arg2: memref<8x17xf32, #tpu.memory_space<vmem>>, %arg3: memref<128x33xf32, #tpu.memory_space<vmem>>, %arg4: memref<33x64xf32, #tpu.memory_space<vmem>>, %arg5: memref<17x32xf32, #tpu.memory_space<vmem>>, %arg6: memref<33x64xf32, #tpu.memory_space<vmem>>, %arg7: memref<2x32xf32, #tpu.memory_space<vmem>>, %arg8: memref<8x256xf32, #tpu.memory_space<vmem>>) attributes {dimension_semantics = [#tpu.dimension_semantics<parallel>], iteration_bounds = array<i64: 2>, scalar_prefetch = 0 : i64, scratch_operands = 0 : i64, tpu.core_type = #tpu.core_type<tc>, window_params = [{transform_indices = @transform_0, window_bounds = array<i64: 64, 33>}, {transform_indices = @transform_1, window_bounds = array<i64: 8, 17>}, {transform_indices = @transform_2, window_bounds = array<i64: 128, 33>}, {pipeline_mode = #tpu.pipeline_mode<synchronous>, transform_indices = @transform_3, window_bounds = array<i64: 33, 64>}, {pipeline_mode = #tpu.pipeline_mode<synchronous>, transform_indices = @transform_4, window_bounds = array<i64: 17, 32>}, {pipeline_mode = #tpu.pipeline_mode<synchronous>, transform_indices = @transform_5, window_bounds = array<i64: 33, 64>}, {pipeline_mode = #tpu.pipeline_mode<synchronous>, transform_indices = @transform_6, window_bounds = array<i64: 2, 32>}, {transform_indices = @transform_7, window_bounds = array<i64: 8, 256>}]} {
    %c0 = arith.constant 0 : index
    %c0_0 = arith.constant 0 : index
    %0 = vector.load %arg1[%c0, %c0_0] : memref<64x33xf32, #tpu.memory_space<vmem>>, vector<64x33xf32>
    %c0_1 = arith.constant 0 : index
    %c0_2 = arith.constant 0 : index
    %1 = vector.load %arg4[%c0_1, %c0_2] : memref<33x64xf32, #tpu.memory_space<vmem>>, vector<33x64xf32>
    %cst = arith.constant dense<0.000000e+00> : vector<64x64xf32>
    %2 = tpu.matmul %0, %1, %cst {dimension_numbers = #tpu.dot_dimension_numbers<[1], [0], [0], [1], [0, 0, 1, 1], [], []>} : vector<64x33xf32>, vector<33x64xf32>, vector<64x64xf32> -> vector<64x64xf32>
    %c0_3 = arith.constant 0 : index
    %c0_4 = arith.constant 0 : index
    %3 = vector.load %arg3[%c0_3, %c0_4] : memref<128x33xf32, #tpu.memory_space<vmem>>, vector<128x33xf32>
    %c0_5 = arith.constant 0 : index
    %c0_6 = arith.constant 0 : index
    %4 = vector.load %arg6[%c0_5, %c0_6] : memref<33x64xf32, #tpu.memory_space<vmem>>, vector<33x64xf32>
    %cst_7 = arith.constant dense<0.000000e+00> : vector<128x64xf32>
    %5 = tpu.matmul %3, %4, %cst_7 {dimension_numbers = #tpu.dot_dimension_numbers<[1], [0], [0], [1], [0, 0, 1, 1], [], []>} : vector<128x33xf32>, vector<33x64xf32>, vector<128x64xf32> -> vector<128x64xf32>
    %c0_8 = arith.constant 0 : index
    %c0_9 = arith.constant 0 : index
    %6 = vector.load %arg2[%c0_8, %c0_9] : memref<8x17xf32, #tpu.memory_space<vmem>>, vector<8x17xf32>
    %c0_10 = arith.constant 0 : index
    %c0_11 = arith.constant 0 : index
    %7 = vector.load %arg5[%c0_10, %c0_11] : memref<17x32xf32, #tpu.memory_space<vmem>>, vector<17x32xf32>
    %cst_12 = arith.constant dense<0.000000e+00> : vector<8x32xf32>
    %8 = tpu.matmul %6, %7, %cst_12 {dimension_numbers = #tpu.dot_dimension_numbers<[1], [0], [0], [1], [0, 0, 1, 1], [], []>} : vector<8x17xf32>, vector<17x32xf32>, vector<8x32xf32> -> vector<8x32xf32>
    %9 = vector.shape_cast %2 : vector<64x64xf32> to vector<8x8x64xf32>
    %10 = vector.shape_cast %5 : vector<128x64xf32> to vector<8x16x64xf32>
    %11 = vector.extract_strided_slice %9 {offsets = [0, 0, 0], sizes = [8, 8, 32], strides = [1, 1, 1]} : vector<8x8x64xf32> to vector<8x8x32xf32>
    %12 = vector.extract_strided_slice %9 {offsets = [0, 0, 32], sizes = [8, 8, 32], strides = [1, 1, 1]} : vector<8x8x64xf32> to vector<8x8x32xf32>
    %13 = vector.extract_strided_slice %10 {offsets = [0, 0, 0], sizes = [8, 8, 32], strides = [1, 1, 1]} : vector<8x16x64xf32> to vector<8x8x32xf32>
    %14 = vector.extract_strided_slice %10 {offsets = [0, 8, 32], sizes = [8, 8, 32], strides = [1, 1, 1]} : vector<8x16x64xf32> to vector<8x8x32xf32>
    "tpu.trace_start"() <{level = 10 : i32, message = "bqd,bkd->bqk"}> : () -> ()
    %cst_13 = arith.constant dense<0.000000e+00> : vector<8x8x8xf32>
    %15 = tpu.matmul %12, %13, %cst_13 {dimension_numbers = #tpu.dot_dimension_numbers<[2], [2], [1], [1], [0, 0, 0, 1, 1, 1], [0], [0]>} : vector<8x8x32xf32>, vector<8x8x32xf32>, vector<8x8x8xf32> -> vector<8x8x8xf32>
    "tpu.trace_stop"() : () -> ()
    %cst_14 = arith.constant 0.176776692 : f32
    %16 = vector.broadcast %cst_14 : f32 to vector<8x8x8xf32>
    %17 = arith.mulf %15, %16 : vector<8x8x8xf32>
    %cst_15 = arith.constant dense<0xFF800000> : vector<8x8xf32>
    %18 = vector.multi_reduction <maximumf>, %17, %cst_15 [2] : vector<8x8x8xf32> to vector<8x8xf32>
    %19 = vector.shape_cast %18 : vector<8x8xf32> to vector<8x8x1xf32>
    %20 = vector.broadcast %19 : vector<8x8x1xf32> to vector<8x8x8xf32>
    %21 = arith.subf %17, %20 : vector<8x8x8xf32>
    %22 = math.exp %21 : vector<8x8x8xf32>
    %cst_16 = arith.constant dense<0.000000e+00> : vector<8x8xf32>
    %23 = vector.multi_reduction <add>, %22, %cst_16 [2] : vector<8x8x8xf32> to vector<8x8xf32>
    %24 = vector.shape_cast %23 : vector<8x8xf32> to vector<8x8x1xf32>
    %25 = vector.broadcast %24 : vector<8x8x1xf32> to vector<8x8x8xf32>
    %26 = arith.divf %22, %25 : vector<8x8x8xf32>
    %27 = vector.shape_cast %8 : vector<8x32xf32> to vector<8x1x32xf32>
    "tpu.trace_start"() <{level = 10 : i32, message = "bqd,bkd->bqk"}> : () -> ()
    %cst_17 = arith.constant dense<0.000000e+00> : vector<8x1x8xf32>
    %28 = tpu.matmul %27, %13, %cst_17 {dimension_numbers = #tpu.dot_dimension_numbers<[2], [2], [1], [1], [0, 0, 0, 1, 1, 1], [0], [0]>} : vector<8x1x32xf32>, vector<8x8x32xf32>, vector<8x1x8xf32> -> vector<8x1x8xf32>
    "tpu.trace_stop"() : () -> ()
    %cst_18 = arith.constant 0.176776692 : f32
    %29 = vector.broadcast %cst_18 : f32 to vector<8x1x8xf32>
    %30 = arith.mulf %28, %29 : vector<8x1x8xf32>
    %cst_19 = arith.constant dense<0xFF800000> : vector<8x1xf32>
    %31 = vector.multi_reduction <maximumf>, %30, %cst_19 [2] : vector<8x1x8xf32> to vector<8x1xf32>
    %32 = vector.shape_cast %31 : vector<8x1xf32> to vector<8x1x1xf32>
    %33 = vector.broadcast %32 : vector<8x1x1xf32> to vector<8x1x8xf32>
    %34 = arith.subf %30, %33 : vector<8x1x8xf32>
    %35 = math.exp %34 : vector<8x1x8xf32>
    %cst_20 = arith.constant dense<0.000000e+00> : vector<8x1xf32>
    %36 = vector.multi_reduction <add>, %35, %cst_20 [2] : vector<8x1x8xf32> to vector<8x1xf32>
    %37 = vector.shape_cast %36 : vector<8x1xf32> to vector<8x1x1xf32>
    %38 = vector.broadcast %37 : vector<8x1x1xf32> to vector<8x1x8xf32>
    %39 = arith.divf %35, %38 : vector<8x1x8xf32>
    %cst_21 = arith.constant 5.000000e-01 : f32
    %40 = vector.broadcast %cst_21 : f32 to vector<8x1x8xf32>
    %41 = arith.mulf %40, %39 : vector<8x1x8xf32>
    %cst_22 = arith.constant 5.000000e-01 : f32
    %42 = vector.broadcast %cst_22 : f32 to vector<8x8x8xf32>
    %43 = arith.mulf %42, %26 : vector<8x8x8xf32>
    %44 = vector.broadcast %41 : vector<8x1x8xf32> to vector<8x8x8xf32>
    %45 = arith.addf %44, %43 : vector<8x8x8xf32>
    "tpu.trace_start"() <{level = 10 : i32, message = "bqk,bkd->bqd"}> : () -> ()
    %cst_23 = arith.constant dense<0.000000e+00> : vector<8x8x32xf32>
    %46 = tpu.matmul %45, %14, %cst_23 {dimension_numbers = #tpu.dot_dimension_numbers<[2], [1], [1], [2], [0, 0, 0, 1, 1, 2], [0], [0]>} : vector<8x8x8xf32>, vector<8x8x32xf32>, vector<8x8x32xf32> -> vector<8x8x32xf32>
    "tpu.trace_stop"() : () -> ()
    %47 = arith.addf %46, %11 : vector<8x8x32xf32>
    %cst_24 = arith.constant 0.000000e+00 : f32
    %48 = vector.broadcast %cst_24 : f32 to vector<8x8x32xf32>
    %49 = arith.maximumf %47, %48 : vector<8x8x32xf32>
    %cst_25 = arith.constant dense<0.000000e+00> : vector<8x8xf32>
    %50 = vector.multi_reduction <add>, %49, %cst_25 [2] : vector<8x8x32xf32> to vector<8x8xf32>
    %51 = vector.shape_cast %50 : vector<8x8xf32> to vector<8x8x1xf32>
    %cst_26 = arith.constant 3.200000e+01 : f32
    %52 = vector.broadcast %cst_26 : f32 to vector<8x8x1xf32>
    %53 = arith.divf %51, %52 : vector<8x8x1xf32>
    %54 = vector.broadcast %53 : vector<8x8x1xf32> to vector<8x8x32xf32>
    %55 = arith.subf %49, %54 : vector<8x8x32xf32>
    %56 = arith.mulf %55, %55 : vector<8x8x32xf32>
    %cst_27 = arith.constant dense<0.000000e+00> : vector<8x8xf32>
    %57 = vector.multi_reduction <add>, %56, %cst_27 [2] : vector<8x8x32xf32> to vector<8x8xf32>
    %58 = vector.shape_cast %57 : vector<8x8xf32> to vector<8x8x1xf32>
    %cst_28 = arith.constant 3.200000e+01 : f32
    %59 = vector.broadcast %cst_28 : f32 to vector<8x8x1xf32>
    %60 = arith.divf %58, %59 : vector<8x8x1xf32>
    %cst_29 = arith.constant 9.99999974E-6 : f32
    %61 = vector.broadcast %cst_29 : f32 to vector<8x8x1xf32>
    %62 = arith.addf %60, %61 : vector<8x8x1xf32>
    %63 = math.rsqrt %62 : vector<8x8x1xf32>
    %64 = vector.broadcast %63 : vector<8x8x1xf32> to vector<8x8x32xf32>
    %65 = arith.mulf %55, %64 : vector<8x8x32xf32>
    %c0_30 = arith.constant 0 : index
    %c0_31 = arith.constant 0 : index
    %66 = vector.load %arg7[%c0_30, %c0_31] : memref<2x32xf32, #tpu.memory_space<vmem>>, vector<1x32xf32>
    %67 = vector.shape_cast %66 : vector<1x32xf32> to vector<1x1x32xf32>
    %68 = vector.broadcast %67 : vector<1x1x32xf32> to vector<8x8x32xf32>
    %69 = arith.mulf %65, %68 : vector<8x8x32xf32>
    %c1 = arith.constant 1 : index
    %c0_32 = arith.constant 0 : index
    %70 = vector.load %arg7[%c1, %c0_32] : memref<2x32xf32, #tpu.memory_space<vmem>>, vector<1x32xf32>
    %71 = vector.shape_cast %70 : vector<1x32xf32> to vector<1x1x32xf32>
    %72 = vector.broadcast %71 : vector<1x1x32xf32> to vector<8x8x32xf32>
    %73 = arith.addf %69, %72 : vector<8x8x32xf32>
    %74 = tpu.transpose %73, [1, 0, 2] : vector<8x8x32xf32> -> vector<8x8x32xf32>
    %75 = vector.shape_cast %74 : vector<8x8x32xf32> to vector<8x256xf32>
    %c0_33 = arith.constant 0 : index
    %c0_34 = arith.constant 0 : index
    %76 = vector.load %arg8[%c0_33, %c0_34] : memref<8x256xf32, #tpu.memory_space<vmem>>, vector<8x256xf32>
    tpu.vector_store %arg8[%c0_33, %c0_34], %75 {strides = array<i32>} : memref<8x256xf32, #tpu.memory_space<vmem>>, vector<8x256xf32>,
    return
  }
  func.func @transform_0(%arg0: i32) -> (i32, i32) {
    %c0_i32 = arith.constant 0 : i32
    %c0_i32_0 = arith.constant 0 : i32
    return %arg0, %c0_i32 : i32, i32
  }
  func.func @transform_1(%arg0: i32) -> (i32, i32) {
    %c0_i32 = arith.constant 0 : i32
    %c0_i32_0 = arith.constant 0 : i32
    return %arg0, %c0_i32 : i32, i32
  }
  func.func @transform_2(%arg0: i32) -> (i32, i32) {
    %c0_i32 = arith.constant 0 : i32
    %c0_i32_0 = arith.constant 0 : i32
    return %arg0, %c0_i32 : i32, i32
  }
  func.func @transform_3(%arg0: i32) -> (i32, i32) {
    %c0_i32 = arith.constant 0 : i32
    %c0_i32_0 = arith.constant 0 : i32
    %c0_i32_1 = arith.constant 0 : i32
    return %c0_i32, %c0_i32_0 : i32, i32
  }
  func.func @transform_4(%arg0: i32) -> (i32, i32) {
    %c0_i32 = arith.constant 0 : i32
    %c0_i32_0 = arith.constant 0 : i32
    %c0_i32_1 = arith.constant 0 : i32
    return %c0_i32, %c0_i32_0 : i32, i32
  }
  func.func @transform_5(%arg0: i32) -> (i32, i32) {
    %c0_i32 = arith.constant 0 : i32
    %c0_i32_0 = arith.constant 0 : i32
    %c0_i32_1 = arith.constant 0 : i32
    return %c0_i32, %c0_i32_0 : i32, i32
  }
  func.func @transform_6(%arg0: i32) -> (i32, i32) {
    %c0_i32 = arith.constant 0 : i32
    %c0_i32_0 = arith.constant 0 : i32
    %c0_i32_1 = arith.constant 0 : i32
    return %c0_i32, %c0_i32_0 : i32, i32
  }
  func.func @transform_7(%arg0: i32) -> (i32, i32) {
    %c0_i32 = arith.constant 0 : i32
    %c0_i32_0 = arith.constant 0 : i32
    return %c0_i32, %arg0 : i32, i32
  }
}

</mosaic_0001>

<bundles_post_ra>
// kernel: hyper_attention_forward.1
= control target key start
LH: loop header
LB: loop body
LE: loop exit
PB: predicated region body
PF: predicated region fallthrough
CT: control target
= control target key end

     0   :  { %s3944_s24 = smov 0   ;;  %s4580_s0 = inlined_call_operand.vmem [shape: f32[128,33], index: 0, kind: input, shape index: {}]   ;;  %s4581_s1 = inlined_call_operand.vmem [shape: f32[16,17], index: 1, kind: input, shape index: {}]   ;;  %s4582_s2 = inlined_call_operand.vmem [shape: f32[256,33], index: 2, kind: input, shape index: {}]   ;;  %s4583_s3 = inlined_call_operand.vmem [shape: f32[33,64], index: 3, kind: input, shape index: {}]   ;;  %s4584_s4 = inlined_call_operand.vmem [shape: f32[17,32], index: 4, kind: input, shape index: {}]   ;;  %s4585_s5 = inlined_call_operand.vmem [shape: f32[33,64], index: 5, kind: input, shape index: {}]   ;;  %s4586_s6 = inlined_call_operand.vmem [shape: f32[2,32], index: 6, kind: input, shape index: {}]   ;;  %s4587_s7 = inlined_call_operand.vmem [shape: f32[8,512], index: 7, kind: output, shape index: {}]  }
   0x1 LB: > { %s3950_s25 = sadd.s32 4294967295, %s3893_s24   ;;  %p3412_p0 = scmp.ge.s32.totalorder %s3893_s24, 1  ;;  %s3893_s24 = sphi %s3944_s24, %s17_s24  }
   0x2   : > { %p258_p1 = scmp.lt.s32.totalorder %s3893_s24, 3 }
   0x4   : > { %p259_p2 = pnand %p3412_p0, %p258_p1 }
   0x5   : > { %v329_v0 = vld [vmem:[%s4583_s3] sm:$0xff] (!%p259_p2)  ;;  %v330_v1 = vld [vmem:[%s4583_s3 + $0x8] sm:$0xff] (!%p259_p2)  ;;  %v331_v2 = vld [vmem:[%s4583_s3 + $0x10] sm:$0xff] (!%p259_p2)  ;;  %s3413_s9 = sshll.u32 (!%p259_p2), %s3950_s25, 3  ;;  %s3416_s14 = sshll.u32 (!%p259_p2), %s3950_s25, 4  ;;  %vm334_vm0 = vcmask (!%p259_p2), 269312  }
   0x6   : > { %262 = sbr.rel (%p259_p2) target bundleno = 1606 (0x646), region = 48  ;;  %v3771_v3 = vpack.c.bf16 (!%p259_p2), %v330_v1, %v329_v0  ;;  %v332_v4 = vld [vmem:[%s4583_s3 + $0x18] sm:$0xff] (!%p259_p2)  ;;  %p300_p3 = scmp.lt.s32.totalorder (!%p259_p2), %s3413_s9, 15  ;;  %v484_v5 = vld [vmem:[%s4585_s5] sm:$0xff] (!%p259_p2)  ;;  %v485_v7 = vld [vmem:[%s4585_s5 + $0x8] sm:$0xff] (!%p259_p2)  ;;  %vm359_vm1 = vcmask (!%p259_p2), 1040384  }
   0x7   : > { %v3775_v6 = vpack.c.bf16 (!%p259_p2), %v332_v4, %v331_v2  ;;  %v486_v8 = vld [vmem:[%s4585_s5 + $0x10] sm:$0xff] (!%p259_p2)  ;;  %v487_v9 = vld [vmem:[%s4585_s5 + $0x18] sm:$0xff] (!%p259_p2)  ;;  %p310_p4 = scmp.lt.s32.totalorder (!%p259_p2), %s3416_s14, 31  ;;  %v3779_v10 = vpack.c.bf16 (!%p259_p2), %v485_v7, %v484_v5  ;;  %v333_v12 = vld [vmem:[%s4583_s3 + $0x20] sm:$0x1] (!%p259_p2)  ;;  %p305_p5 = scmp.lt.s32.totalorder (!%p259_p2), %s3950_s25, 1 }
   0x8   : > { %3772 = vmatprep.subr.bf16.mxu0 (!%p259_p2), %v3771_v3  ;;  %v3783_v11 = vpack.c.bf16 (!%p259_p2), %v487_v9, %v486_v8  ;;  %v488_v14 = vld [vmem:[%s4585_s5 + $0x20] sm:$0x1] (!%p259_p2)  ;;  %v687_v16 = vld [vmem:[%s4584_s4 + $0x8] sm:$0xff] (!%p259_p2)  ;;  %v3895_v23 = vmov (!%p259_p2), 0.0|0.0   ;;  %v3896_v27 = vmov (!%p259_p2), 0.0   ;;  %vm3897_vm2 = vmmov (!%p259_p2), 0  }
   0x9   : > { %3774 = vmatpush3.bf16.msra.mxu0 (!%p259_p2), %v3771_v3  ;;  %3780 = vmatprep.subr.bf16.mxu1 (!%p259_p2), %v3779_v10  ;;  %v686_v15 = vld [vmem:[%s4584_s4] sm:$0xff] (!%p259_p2)  ;;  %v688_v28 = vld [vmem:[%s4584_s4 + $0x10] sm:$0x1] (!%p259_p2)  ;;  %vm689_vm3 = vcmask (!%p259_p2), 138240   ;;  %vm769_vm4 = vcmask (!%p259_p2), 261120   ;;  %s3898_s23 = smov (!%p259_p2), 96   ;;  %v1493_v9 = vlaneseq (!%p259_p2) }
   0xa   : > { %3776 = vmatprep.subr.bf16.mxu0 (!%p259_p2), %v3775_v6  ;;  %3782 = vmatpush3.bf16.msra.mxu1 (!%p259_p2), %v3779_v10  ;;  %v3788_v20 = vpack.c.bf16 (!%p259_p2), %v687_v16, %v686_v15  ;;  %v3899_v7 = vmov (!%p259_p2), 1966171168   ;;  %vm1399_vm5 = vcmask (!%p259_p2), 64512   ;;  %vm2122_vm6 = vcmask (!%p259_p2), 57344   ;;  %s3902_s30 = smov (!%p259_p2), 64   ;;  %s3903_s8 = smov (!%p259_p2), 32  }
   0xb   : > { %3784 = vmatprep.subr.bf16.mxu1 (!%p259_p2), %v3783_v11  ;;  %v1491_v8 = vunpack.c.l.s4 (!%p259_p2), %v3899_v7  ;;  %vm3319_vm7 = vcmask (!%p259_p2), 523264   ;;  %vm3321_vm8 = vcmask (!%p259_p2), 785408  }
   0xd   : > { %s4589_s9 = smov (!%p300_p3, %s3413_s9), 15  ;;  %s4591_s14 = smov (!%p310_p4, %s3416_s14), 31  ;;  %3778 = vmatpush3.bf16.msra.mxu0 %v3775_v6 }
   0xe   : > { %s3414_s21 = sshll.u32 %s4589_s9, 3  ;;  %s3417_s29 = sshll.u32 %s4591_s14, 3  ;;  %3594 = vmatprep.subr.msk.mxu0 %vm359_vm1, %v333_v12  ;;  %3786 = vmatpush3.bf16.msra.mxu1 %v3783_v11  ;;  %v1492_v11 = vunpack.c.0.s8 %v1491_v8 }
   0xf   : > { %s3986_s28 = scalar_lea.vmem %s4580_s0, %s3414_s21  ;;  %s3992_s9 = scalar_lea.vmem %s4582_s2, %s3417_s29  ;;  %3616 = vmatprep.subr.msk.mxu1 %vm359_vm1, %v488_v14 }
  0x10   : > { %v321_v13 = vld [vmem:[%s3986_s28] sm:$0xff]  ;;  %v322_v18 = vld [vmem:[%s3986_s28 + $0x8] sm:$0xff]  ;;  %v323_v19 = vld [vmem:[%s3986_s28 + $0x10] sm:$0xff]  ;;  %s306_s18 = scalar_select %p305_p5, %s3950_s25, 1 }
  0x11   : > { %3596 = vmatprep.mubr.msk.f32.mxu0 %vm334_vm0, %v321_v13  ;;  %v468_v17 = vld [vmem:[%s3992_s9] sm:$0xff]  ;;  %3595 = vmatpush3.msk.msra.mxu0 %vm359_vm1, %v333_v12  ;;  %v469_v21 = vld [vmem:[%s3992_s9 + $0x8] sm:$0xff]  ;;  %v470_v22 = vld [vmem:[%s3992_s9 + $0x10] sm:$0xff]  ;;  %v4145_v12 = vshrl.u32 %v1493_v9, 7 }
  0x12   : > { %3618 = vmatprep.mubr.msk.f32.mxu1 %vm334_vm0, %v468_v17  ;;  %3597 = vmatmul.mubr.msk.f32.vlgmr.msra.gmra.mrb[0].mxu0 %vm334_vm0, %v322_v18  ;;  %v324_v24 = vld [vmem:[%s3986_s28 + $0x18] sm:$0xff]  ;;  %v325_v25 = vld [vmem:[%s3986_s28 + $0x20] sm:$0xff]  ;;  %v326_v30 = vld [vmem:[%s3986_s28 + $0x28] sm:$0xff]  ;;  %s3415_s19 = sshll.u32 %s306_s18, 3 }
  0x13   : > { %3787 = vmatprep.subr.bf16.mxu0 %v3895_v23  ;;  %3599 = vmatprep.mubr.msk.f32.mxu0 %vm334_vm0, %v323_v19  ;;  %v471_v26 = vld [vmem:[%s3992_s9 + $0x18] sm:$0xff]  ;;  %v472_v29 = vld [vmem:[%s3992_s9 + $0x20] sm:$0xff]  ;;  %v327_v31 = vld [vmem:[%s3986_s28 + $0x30] sm:$0xff]  ;;  %s308_s22 = scalar_lea.vmem %s4581_s1, %s3415_s19  ;;  %v4154_v15 = vsub.s32 %v1492_v11, %v4145_v12 }
  0x14   : > { %3617 = vmatpush3.msk.msra.mxu1 %vm359_vm1, %v488_v14  ;;  %3789 = vmatpush3.bf16.msra.mxu0 %v3788_v20  ;;  %v473_v32 = vld [vmem:[%s3992_s9 + $0x28] sm:$0xff]  ;;  %v474_v33 = vld [vmem:[%s3992_s9 + $0x30] sm:$0xff]  ;;  %v328_v34 = vld [vmem:[%s3986_s28 + $0x38] sm:$0xff] }
  0x15   : > { %3619 = vmatmul.mubr.msk.f32.vlgmr.msra.gmra.mrb[0].mxu1 %vm334_vm0, %v469_v21  ;;  %3646 = vmatprep.subr.mxu0 %v3896_v27  ;;  %v475_v35 = vld [vmem:[%s3992_s9 + $0x38] sm:$0xff]  ;;  %v476_v36 = vld [vmem:[%s3992_s9 + $0x40] sm:$0xff]  ;;  %v477_v38 = vld [vmem:[%s3992_s9 + $0x48] sm:$0xff] }
  0x16   : > { %3621 = vmatprep.mubr.msk.f32.mxu1 %vm334_vm0, %v470_v22  ;;  %3600 = vmatmul.mubr.msk.f32.gmra.mrb[2].mxu0 %vm334_vm0, %v324_v24  ;;  %v685_v37 = vld [vmem:[%s308_s22] sm:$0xff]  ;;  %v478_v39 = vld [vmem:[%s3992_s9 + $0x50] sm:$0xff]  ;;  %v479_v40 = vld [vmem:[%s3992_s9 + $0x58] sm:$0xff] }
  0x17   : > { %3671 = vmatprep.subr.mxu1 %v3896_v27  ;;  %3602 = vmatprep.mubr.msk.f32.mxu0 %vm334_vm0, %v325_v25  ;;  %v480_v41 = vld [vmem:[%s3992_s9 + $0x60] sm:$0xff]  ;;  %v481_v42 = vld [vmem:[%s3992_s9 + $0x68] sm:$0xff]  ;;  %v482_v43 = vld [vmem:[%s3992_s9 + $0x70] sm:$0xff] }
  0x18   : > { %3647 = vmatpush3.msk.msra.mxu0 %vm359_vm1, %v688_v28  ;;  %v483_v44 = vld [vmem:[%s3992_s9 + $0x78] sm:$0xff]  ;;  %s3418_s9 = sshll.u32 %s3950_s25, 1 }
  0x19   : > { %3622 = vmatmul.mubr.msk.f32.gmra.mrb[2].mxu1 %vm334_vm0, %v471_v26  ;;  %3651 = vmatprep.subr.mxu0 %v3896_v27  ;;  %p316_p6 = scmp.lt.s32.totalorder %s3418_s9, 3 }
  0x1a   : > { %3624 = vmatprep.mubr.msk.f32.mxu1 %vm334_vm0, %v472_v29  ;;  %3603 = vmatmul.mubr.msk.f32.gmra.mrb[4].mxu0 %vm334_vm0, %v326_v30 }
  0x1b   : > { %3605 = vmatprep.mubr.msk.f32.mxu0 %vm334_vm0, %v327_v31  ;;  %s4593_s9 = smov (!%p316_p6, %s3418_s9), 3 }
  0x1c   : > { %s3419_s10 = sshll.u32 %s4593_s9, 3 }
  0x1d   : > { %3625 = vmatmul.mubr.msk.f32.gmra.mrb[4].mxu1 %vm334_vm0, %v473_v32  ;;  %s319_s13 = scalar_lea.vmem %s4587_s7, %s3419_s10 }
  0x1e   : > { %3627 = vmatprep.mubr.msk.f32.mxu1 %vm334_vm0, %v474_v33  ;;  %3606 = vmatmul.mubr.msk.f32.gmra.mrb[6].mxu0 %vm334_vm0, %v328_v34 }
  0x1f   : > { %3648 = vmatprep.mubr.msk.f32.mxu0 %vm3897_vm2, %v3896_v27 }
  0x21   : > { %3628 = vmatmul.mubr.msk.f32.gmra.mrb[6].mxu1 %vm334_vm0, %v475_v35 }
  0x22   : > { %3630 = vmatprep.mubr.msk.f32.mxu1 %vm334_vm0, %v476_v36  ;;  %3649 = vmatmul.mubr.msk.f32.vlgmr.msra.gmra.mrb[8].mxu0 %vm689_vm3, %v685_v37 }
  0x23   : > { %3653 = vmatprep.mubr.msk.f32.mxu0 %vm3897_vm2, %v3896_v27 }
  0x25   : > { %3631 = vmatmul.mubr.msk.f32.gmra.mrb[8].mxu1 %vm334_vm0, %v477_v38 }
  0x26   : > { %3633 = vmatprep.mubr.msk.f32.mxu1 %vm334_vm0, %v478_v39 }
  0x29   : > { %3634 = vmatmul.mubr.msk.f32.gmra.mrb[10].mxu1 %vm334_vm0, %v479_v40 }
  0x2a   : > { %3636 = vmatprep.mubr.msk.f32.mxu1 %vm334_vm0, %v480_v41 }
  0x2d   : > { %3637 = vmatmul.mubr.msk.f32.gmra.mrb[12].mxu1 %vm334_vm0, %v481_v42 }
  0x2e   : > { %3639 = vmatprep.mubr.msk.f32.mxu1 %vm334_vm0, %v482_v43 }
  0x31   : > { %3640 = vmatmul.mubr.msk.f32.gmra.mrb[14].mxu1 %vm334_vm0, %v483_v44 }
  0x32   : > { %3673 = vmatprep.mubr.msk.f32.mxu1 %vm3897_vm2, %v3896_v27 }
  0xe5   : > { %v4074_v45 = vpop.f32.mrb[0].mxu0 }
  0xe6   : > { %v4076_v46 = vpop.f32.mrb[1].mxu0 }
  0xe7   : > { %767 = vrot.lane.b32.xlu0 %v4076_v46, %s3898_s23 }
  0xe8   : > { %v4080_v47 = vpop.f32.mrb[0].mxu1 }
  0xe9   : > { %v4082_v48 = vpop.f32.mrb[1].mxu1  ;;  %v4084_v49 = vpop.f32.mrb[2].mxu0 }
  0xea   : > { %3652 = vmatpush3.xpose.msk.msra.mxu0 %vm769_vm4, %v4082_v48  ;;  %v4088_v50 = vpop.f32.mrb[3].mxu0 }
  0xeb   : > { %3656 = vmatprep.subr.mxu0 %v3896_v27  ;;  %846 = vrot.lane.b32.xlu0 %v4074_v45, %s3898_s23 }
  0xec   : > { %924 = vrot.lane.b32.xlu1 %v4088_v50, %s3898_s23  ;;  %v4095_v51 = vpop.f32.mrb[2].mxu1 }
  0xed   : > { %v4097_v52 = vpop.f32.mrb[3].mxu1  ;;  %v4099_v53 = vpop.f32.mrb[4].mxu0 }
  0xee   : > { %v4101_v54 = vpop.f32.mrb[5].mxu0 }
  0xef   : > { %1080 = vrot.lane.b32.xlu0 %v4101_v54, %s3898_s23 }
  0xf0   : > { %1002 = vrot.lane.b32.xlu1 %v4084_v49, %s3898_s23  ;;  %v4107_v55 = vpop.f32.mrb[4].mxu1 }
  0xf1   : > { %v4109_v56 = vpop.f32.mrb[5].mxu1  ;;  %v4111_v57 = vpop.f32.mrb[6].mxu0 }
  0xf2   : > { %v4113_v58 = vpop.f32.mrb[7].mxu0 }
  0xf3   : > { %1236 = vrot.lane.b32.xlu0 %v4113_v58, %s3898_s23 }
  0xf4   : > { %1158 = vrot.lane.b32.xlu1 %v4099_v53, %s3898_s23  ;;  %v4119_v59 = vpop.f32.mrb[6].mxu1 }
  0xf5   : > { %v4121_v60 = vpop.f32.mrb[7].mxu1  ;;  %v762_v61 = vpop.f32.mrb[8].mxu0 }
  0xf6   : > { %v3650_v62 = vpop.f32.mrb[9].mxu0  ;;  %v1496_v18 = vrot.slane %v762_v61, %v4154_v15  ;;  %v1489_v22 = vcombine.high %v762_v61, %v762_v61 }
  0xf8   : > { %1314 = vrot.lane.b32.xlu1 %v4111_v57, %s3898_s23  ;;  %v4125_v63 = vpop.f32.mrb[8].mxu1  ;;  %v1512_v20 = vrot.slane %v1496_v18, %v4154_v15  ;;  %v1503_v24 = vrot.slane %v1489_v22, %v4154_v15  ;;  %v1504_v25 = vcombine.high %v1496_v18, %v1496_v18 }
  0xf9   : > { %v4127_v0 = vpop.f32.mrb[9].mxu1 }
  0xfa   : > { %3672 = vmatpush3.xpose.msk.msra.mxu1 %vm769_vm4, %v4127_v0  ;;  %v1534_v23 = vcombine.high %v1512_v20, %v1512_v20  ;;  %v1519_v28 = vrot.slane %v1503_v24, %v4154_v15  ;;  %v1526_v29 = vrot.slane %v1504_v25, %v4154_v15  ;;  %v1505_v30 = vcombine.high %v1503_v24, %v1503_v24 }
  0xfb   : > { %3681 = vmatprep.subr.mxu1 %v3896_v27 }
  0xfc   : > { %v4132_v1 = vpop.f32.mrb[10].mxu1  ;;  %v1535_v31 = vcombine.high %v1519_v28, %v1519_v28  ;;  %v1536_v32 = vcombine.high %v1526_v29, %v1526_v29  ;;  %v1533_v33 = vrot.slane %v1505_v30, %v4154_v15 }
  0xfd   : > { %v4134_v2 = vpop.f32.mrb[11].mxu1 }
  0xfe   : > { %v1537_v34 = vcombine.high %v1533_v33, %v1533_v33 }
 0x100   : > { %v4136_v3 = vpop.f32.mrb[12].mxu1 }
 0x101   : > { %v4138_v4 = vpop.f32.mrb[13].mxu1 }
 0x104   : > { %v4140_v5 = vpop.f32.mrb[14].mxu1 }
 0x105   : > { %v4142_v6 = vpop.f32.mrb[15].mxu1 }
 0x159   : > { %v768_v10 = vpop.permute.xlu0 %767 }
 0x15a   : > { %3654 = vmatmul.mubr.msk.f32.vlgmr.msra.gmra.mrb[10].mxu0 %vm769_vm4, %v768_v10 }
 0x15b   : > { %3657 = vmatpush3.xpose.msk.msra.mxu0 %vm769_vm4, %v4097_v52  ;;  %3658 = vmatprep.mubr.msk.f32.mxu0 %vm3897_vm2, %v3896_v27 }
 0x15c   : > { %3661 = vmatprep.subr.mxu0 %v3896_v27 }
 0x15d   : > { %v847_v13 = vpop.permute.xlu0 %846 }
 0x15e   : > { %v925_v14 = vpop.permute.xlu1 %924  ;;  %3659 = vmatmul.mubr.msk.f32.vlgmr.msra.gmra.mrb[12].mxu0 %vm769_vm4, %v847_v13 }
 0x15f   : > { %3662 = vmatpush3.xpose.msk.msra.mxu0 %vm769_vm4, %v4109_v56  ;;  %3663 = vmatprep.mubr.msk.f32.mxu0 %vm3897_vm2, %v3896_v27 }
 0x160   : > { %3666 = vmatprep.subr.mxu0 %v3896_v27 }
 0x161   : > { %v1081_v17 = vpop.permute.xlu0 %1080 }
 0x162   : > { %v1003_v16 = vpop.permute.xlu1 %1002  ;;  %3664 = vmatmul.mubr.msk.f32.vlgmr.msra.gmra.mrb[14].mxu0 %vm769_vm4, %v925_v14  ;;  %3674 = vmatmul.mubr.msk.f32.vlgmr.msra.gmra.mrb[16].mxu1 %vm769_vm4, %v1081_v17 }
 0x163   : > { %3667 = vmatpush3.xpose.msk.msra.mxu0 %vm769_vm4, %v4121_v60  ;;  %3682 = vmatpush3.xpose.msk.msra.mxu1 %vm769_vm4, %v4138_v4 }
 0x164   : > { %3668 = vmatprep.mubr.msk.f32.mxu0 %vm3897_vm2, %v3896_v27  ;;  %3676 = vmatprep.subr.mxu0 %v3896_v27 }
 0x165   : > { %3683 = vmatprep.mubr.msk.f32.mxu1 %vm3897_vm2, %v3896_v27  ;;  %3691 = vmatprep.subr.mxu1 %v3896_v27  ;;  %v1237_v19 = vpop.permute.xlu0 %1236 }
 0x166   : > { %3669 = vmatmul.mubr.msk.f32.vlgmr.msra.gmra.mrb[16].mxu0 %vm769_vm4, %v1003_v16  ;;  %3684 = vmatmul.mubr.msk.f32.vlgmr.msra.gmra.mrb[18].mxu1 %vm769_vm4, %v1237_v19  ;;  %v1159_v21 = vpop.permute.xlu1 %1158 }
 0x167   : > { %3677 = vmatpush3.xpose.msk.msra.mxu0 %vm769_vm4, %v4134_v2  ;;  %3692 = vmatpush3.xpose.msk.msra.mxu1 %vm769_vm4, %v4082_v48 }
 0x168   : > { %3678 = vmatprep.mubr.msk.f32.mxu0 %vm3897_vm2, %v3896_v27  ;;  %3686 = vmatprep.subr.mxu0 %v3896_v27 }
 0x169   : > { %3693 = vmatprep.mubr.msk.f32.mxu1 %vm3897_vm2, %v3896_v27  ;;  %3701 = vmatprep.subr.mxu1 %v3896_v27 }
 0x16a   : > { %3679 = vmatmul.mubr.msk.f32.vlgmr.msra.gmra.mrb[18].mxu0 %vm769_vm4, %v1159_v21  ;;  %3694 = vmatmul.mubr.msk.f32.vlgmr.msra.gmra.mrb[20].mxu1 %vm769_vm4, %v1512_v20  ;;  %v1315_v26 = vpop.permute.xlu1 %1314 }
 0x16b   : > { %3687 = vmatpush3.xpose.msk.msra.mxu0 %vm769_vm4, %v4142_v6  ;;  %3702 = vmatpush3.xpose.msk.msra.mxu1 %vm769_vm4, %v4109_v56 }
 0x16c   : > { %3688 = vmatprep.mubr.msk.f32.mxu0 %vm3897_vm2, %v3896_v27  ;;  %3696 = vmatprep.subr.mxu0 %v3896_v27 }
 0x16d   : > { %3703 = vmatprep.mubr.msk.f32.mxu1 %vm3897_vm2, %v3896_v27  ;;  %3711 = vmatprep.subr.mxu1 %v3896_v27 }
 0x16e   : > { %3689 = vmatmul.mubr.msk.f32.vlgmr.msra.gmra.mrb[20].mxu0 %vm769_vm4, %v1315_v26  ;;  %3704 = vmatmul.mubr.msk.f32.vlgmr.msra.gmra.mrb[22].mxu1 %vm769_vm4, %v1534_v23 }
 0x16f   : > { %3697 = vmatpush3.xpose.msk.msra.mxu0 %vm769_vm4, %v4097_v52  ;;  %3712 = vmatpush3.xpose.msk.msra.mxu1 %vm769_vm4, %v4127_v0 }
 0x170   : > { %3698 = vmatprep.mubr.msk.f32.mxu0 %vm3897_vm2, %v3896_v27  ;;  %3706 = vmatprep.subr.mxu0 %v3896_v27 }
 0x171   : > { %3713 = vmatprep.mubr.msk.f32.mxu1 %vm3897_vm2, %v3896_v27  ;;  %3721 = vmatprep.subr.mxu1 %v3896_v27 }
 0x172   : > { %3699 = vmatmul.mubr.msk.f32.vlgmr.msra.gmra.mrb[22].mxu0 %vm769_vm4, %v1526_v29  ;;  %3714 = vmatmul.mubr.msk.f32.vlgmr.msra.gmra.mrb[24].mxu1 %vm769_vm4, %v1519_v28 }
 0x173   : > { %3707 = vmatpush3.xpose.msk.msra.mxu0 %vm769_vm4, %v4121_v60  ;;  %3722 = vmatpush3.xpose.msk.msra.mxu1 %vm769_vm4, %v4138_v4 }
 0x174   : > { %3708 = vmatprep.mubr.msk.f32.mxu0 %vm3897_vm2, %v3896_v27  ;;  %3716 = vmatprep.subr.mxu0 %v3896_v27 }
 0x175   : > { %3723 = vmatprep.mubr.msk.f32.mxu1 %vm3897_vm2, %v3896_v27  ;;  %3731 = vmatprep.subr.mxu1 %v3896_v27 }
 0x176   : > { %3709 = vmatmul.mubr.msk.f32.vlgmr.msra.gmra.mrb[24].mxu0 %vm769_vm4, %v1536_v32  ;;  %3724 = vmatmul.mubr.msk.f32.vlgmr.msra.gmra.mrb[26].mxu1 %vm769_vm4, %v1535_v31 }
 0x177   : > { %3717 = vmatpush3.xpose.msk.msra.mxu0 %vm769_vm4, %v4134_v2  ;;  %3718 = vmatprep.mubr.msk.f32.mxu0 %vm3897_vm2, %v3896_v27 }
 0x178   : > { %3726 = vmatprep.subr.mxu0 %v3896_v27  ;;  %3733 = vmatprep.mubr.msk.f32.mxu1 %vm3897_vm2, %v3896_v27 }
 0x17a   : > { %3719 = vmatmul.mubr.msk.f32.vlgmr.msra.gmra.mrb[26].mxu0 %vm769_vm4, %v1533_v33 }
 0x17b   : > { %3727 = vmatpush3.xpose.msk.msra.mxu0 %vm769_vm4, %v4142_v6  ;;  %3728 = vmatprep.mubr.msk.f32.mxu0 %vm3897_vm2, %v3896_v27 }
 0x17c   : > { %3736 = vmatprep.subr.mxu0 %v3896_v27 }
 0x17e   : > { %3729 = vmatmul.mubr.msk.f32.vlgmr.msra.gmra.mrb[28].mxu0 %vm769_vm4, %v1537_v34 }
 0x17f   : > { %3738 = vmatprep.mubr.msk.f32.mxu0 %vm3897_vm2, %v3896_v27 }
 0x22d   : > { %v841_v35 = vpop.f32.mrb[10].mxu0 }
 0x22e   : > { %v4245_v36 = vmul.f32 0.17677669, %v841_v35  ;;  %v3655_v37 = vpop.f32.mrb[11].mxu0 }
 0x230   : > { %v1400_v38 = vsel %vm1399_vm5, %v4245_v36, -inf }
 0x231   : > { %1401 = vmax.xlane.f32.xlu0 %v1400_v38  ;;  %v919_v39 = vpop.f32.mrb[12].mxu0 }
 0x232   : > { %v4249_v40 = vmul.f32 0.17677669, %v919_v39  ;;  %v3660_v41 = vpop.f32.mrb[13].mxu0 }
 0x234   : > { %v1403_v42 = vsel %vm1399_vm5, %v4249_v40, -inf }
 0x235   : > { %1404 = vmax.xlane.f32.xlu0 %v1403_v42  ;;  %v997_v43 = vpop.f32.mrb[14].mxu0  ;;  %v1153_v44 = vpop.f32.mrb[16].mxu1 }
 0x236   : > { %v4253_v48 = vmul.f32 0.17677669, %v997_v43  ;;  %v3665_v52 = vpop.f32.mrb[15].mxu0  ;;  %v4255_v56 = vmul.f32 0.17677669, %v1153_v44  ;;  %v3675_v60 = vpop.f32.mrb[17].mxu1 }
 0x238   : > { %v1406_v61 = vsel %vm1399_vm5, %v4253_v48, -inf  ;;  %v1412_v2 = vsel %vm1399_vm5, %v4255_v56, -inf }
 0x239   : > { %1407 = vmax.xlane.f32.xlu1 %v1406_v61  ;;  %v1075_v62 = vpop.f32.mrb[16].mxu0  ;;  %v1309_v0 = vpop.f32.mrb[18].mxu1 }
 0x23a   : > { %v4261_v4 = vmul.f32 0.17677669, %v1075_v62  ;;  %v3670_v6 = vpop.f32.mrb[17].mxu0  ;;  %v4263_v7 = vmul.f32 0.17677669, %v1309_v0  ;;  %v3685_v8 = vpop.f32.mrb[19].mxu1 }
 0x23c   : > { %v1409_v9 = vsel %vm1399_vm5, %v4261_v4, -inf  ;;  %v1418_v16 = vsel %vm1399_vm5, %v4263_v7, -inf }
 0x23d   : > { %v1606_v10 = vpop.f32.mrb[20].mxu1  ;;  %1413 = vmax.xlane.f32.xlu1 %v1412_v2  ;;  %1410 = vmax.xlane.f32.xlu0 %v1409_v9  ;;  %v1231_v11 = vpop.f32.mrb[18].mxu0 }
 0x23e   : > { %v4267_v13 = vmul.f32 0.17677669, %v1606_v10  ;;  %v3680_v14 = vpop.f32.mrb[19].mxu0  ;;  %v3695_v15 = vpop.f32.mrb[21].mxu1  ;;  %v4271_v17 = vmul.f32 0.17677669, %v1231_v11 }
 0x240   : > { %v2123_v18 = vsel %vm2122_vm6, %v4267_v13, -inf  ;;  %v1415_v25 = vsel %vm1399_vm5, %v4271_v17, -inf }
 0x241   : > { %v1750_v19 = vpop.f32.mrb[22].mxu1  ;;  %1419 = vmax.xlane.f32.xlu1 %v1418_v16  ;;  %2124 = vmax.xlane.f32.xlu0 %v2123_v18  ;;  %v1387_v20 = vpop.f32.mrb[20].mxu0 }
 0x242   : > { %v4275_v21 = vmul.f32 0.17677669, %v1750_v19  ;;  %v3690_v22 = vpop.f32.mrb[21].mxu0  ;;  %v3705_v23 = vpop.f32.mrb[23].mxu1  ;;  %v4303_v8 = vmul.f32 0.17677669, %v1387_v20 }
 0x244   : > { %v2129_v24 = vsel %vm2122_vm6, %v4275_v21, -inf  ;;  %v1421_v10 = vsel %vm1399_vm5, %v4303_v8, -inf }
 0x245   : > { %v1894_v26 = vpop.f32.mrb[24].mxu1  ;;  %2130 = vmax.xlane.f32.xlu1 %v2129_v24  ;;  %1416 = vmax.xlane.f32.xlu0 %v1415_v25  ;;  %v1678_v28 = vpop.f32.mrb[22].mxu0 }
 0x246   : > { %v4281_v29 = vmul.f32 0.17677669, %v1678_v28  ;;  %v3700_v30 = vpop.f32.mrb[23].mxu0  ;;  %v3715_v31 = vpop.f32.mrb[25].mxu1  ;;  %v4283_v32 = vmul.f32 0.17677669, %v1894_v26 }
 0x248   : > { %v2126_v33 = vsel %vm2122_vm6, %v4281_v29, -inf  ;;  %v2135_v42 = vsel %vm2122_vm6, %v4283_v32, -inf }
 0x249   : > { %v2038_v34 = vpop.f32.mrb[26].mxu1  ;;  %2127 = vmax.xlane.f32.xlu1 %v2126_v33  ;;  %v1822_v35 = vpop.f32.mrb[24].mxu0 }
 0x24a   : > { %v4287_v37 = vmul.f32 0.17677669, %v1822_v35  ;;  %v3710_v38 = vpop.f32.mrb[25].mxu0  ;;  %v3725_v39 = vpop.f32.mrb[27].mxu1  ;;  %v4289_v41 = vmul.f32 0.17677669, %v2038_v34 }
 0x24c   : > { %v2132_v43 = vsel %vm2122_vm6, %v4287_v37, -inf  ;;  %v2141_v61 = vsel %vm2122_vm6, %v4289_v41, -inf }
 0x24d   : > { %2136 = vmax.xlane.f32.xlu1 %v2135_v42  ;;  %2133 = vmax.xlane.f32.xlu0 %v2132_v43  ;;  %v1966_v44 = vpop.f32.mrb[26].mxu0 }
 0x24e   : > { %v4295_v52 = vmul.f32 0.17677669, %v1966_v44  ;;  %v3720_v60 = vpop.f32.mrb[27].mxu0 }
 0x250   : > { %v2138_v62 = vsel %vm2122_vm6, %v4295_v52, -inf }
 0x251   : > { %2142 = vmax.xlane.f32.xlu1 %v2141_v61  ;;  %2139 = vmax.xlane.f32.xlu0 %v2138_v62  ;;  %v2110_v0 = vpop.f32.mrb[28].mxu0 }
 0x252   : > { %v4301_v2 = vmul.f32 0.17677669, %v2110_v0  ;;  %v3730_v6 = vpop.f32.mrb[29].mxu0 }
 0x254   : > { %v2144_v9 = vsel %vm2122_vm6, %v4301_v2, -inf }
 0x255   : > { %2145 = vmax.xlane.f32.xlu0 %v2144_v9 }
 0x259   : > { %1422 = vmax.xlane.f32.xlu0 %v1421_v10 }
 0x262   : > { %2268 = vrot.lane.b32.xlu1 %v4080_v47, %s3898_s23 }
 0x266   : > { %2422 = vrot.lane.b32.xlu1 %v4107_v55, %s3898_s23 }
 0x26a   : > { %2499 = vrot.lane.b32.xlu1 %v4119_v59, %s3898_s23 }
 0x26f   : > { %2345 = vrot.lane.b32.xlu0 %v4095_v51, %s3898_s23 }
 0x2be   : > { %v1402_v11 = vpop.xlane.xlu0 %1401 }
 0x2bf   : > { %v1424_v14 = vsub.f32 %v4245_v36, %v1402_v11 }
 0x2c1   : > { %v1432_v15 = vmul.f32 1.442695, %v1424_v14 }
 0x2c2   : > { %v1405_v16 = vpop.xlane.xlu0 %1404 }
 0x2c3   : > { %3807 = vpow2.f32 %v1432_v15  ;;  %v1425_v18 = vsub.f32 %v4249_v40, %v1405_v16 }
 0x2c5   : > { %v1434_v19 = vmul.f32 1.442695, %v1425_v18 }
 0x2c6   : > { %v1408_v20 = vpop.xlane.xlu1 %1407 }
 0x2c7   : > { %3809 = vpow2.f32 %v1434_v19  ;;  %v1426_v47 = vsub.f32 %v4253_v48, %v1408_v20 }
 0x2c9   : > { %v1436_v55 = vmul.f32 1.442695, %v1426_v47 }
 0x2ca   : > { %v1414_v22 = vpop.xlane.xlu1 %1413  ;;  %v1411_v23 = vpop.xlane.xlu0 %1410 }
 0x2cb   : > { %3811 = vpow2.f32 %v1436_v55  ;;  %v1428_v59 = vsub.f32 %v4255_v56, %v1414_v22  ;;  %v1427_v51 = vsub.f32 %v4261_v4, %v1411_v23 }
 0x2cd   : > { %v4322_v24 = vpop.eup %3807  ;;  %v1440_v36 = vmul.f32 1.442695, %v1428_v59  ;;  %v1438_v25 = vmul.f32 1.442695, %v1427_v51 }
 0x2ce   : > { %v1420_v26 = vpop.xlane.xlu1 %1419  ;;  %v2125_v28 = vpop.xlane.xlu0 %2124  ;;  %v1448_v40 = vsel %vm1399_vm5, %v4322_v24, 0.0 }
 0x2cf   : > { %3813 = vpow2.f32 %v1440_v36  ;;  %v1430_v48 = vsub.f32 %v4263_v7, %v1420_v26  ;;  %v2147_v30 = vsub.f32 %v4267_v13, %v2125_v28  ;;  %1449 = vadd.xlane.f32.xlu1 %v1448_v40 }
 0x2d0   : > { %3815 = vpow2.f32 %v1438_v25 }
 0x2d1   : > { %v4328_v31 = vpop.eup %3809  ;;  %v1444_v56 = vmul.f32 1.442695, %v1430_v48  ;;  %v2155_v4 = vmul.f32 1.442695, %v2147_v30 }
 0x2d2   : > { %v2131_v33 = vpop.xlane.xlu1 %2130  ;;  %v1417_v34 = vpop.xlane.xlu0 %1416  ;;  %v1451_v35 = vsel %vm1399_vm5, %v4328_v31, 0.0 }
 0x2d3   : > { %3817 = vpow2.f32 %v1444_v56  ;;  %v2149_v38 = vsub.f32 %v4275_v21, %v2131_v33  ;;  %v1429_v39 = vsub.f32 %v4271_v17, %v1417_v34  ;;  %1452 = vadd.xlane.f32.xlu0 %v1451_v35 }
 0x2d4   : > { %3819 = vpow2.f32 %v2155_v4 }
 0x2d5   : > { %v4334_v7 = vpop.eup %3811  ;;  %v2159_v13 = vmul.f32 1.442695, %v2149_v38  ;;  %v1442_v42 = vmul.f32 1.442695, %v1429_v39 }
 0x2d6   : > { %v2128_v43 = vpop.xlane.xlu1 %2127  ;;  %v1454_v44 = vsel %vm1399_vm5, %v4334_v7, 0.0 }
 0x2d7   : > { %1455 = vadd.xlane.f32.xlu1 %v1454_v44  ;;  %3821 = vpow2.f32 %v1442_v42 }
 0x2d8   : > { %3823 = vpow2.f32 %v2159_v13 }
 0x2d9   : > { %v4338_v60 = vpop.eup %3813 }
 0x2da   : > { %v4340_v61 = vpop.eup %3815  ;;  %v2137_v21 = vpop.xlane.xlu1 %2136  ;;  %v1460_v17 = vsel %vm1399_vm5, %v4338_v60, 0.0 }
 0x2db   : > { %v2134_v62 = vpop.xlane.xlu0 %2133  ;;  %v2151_v0 = vsub.f32 %v4283_v32, %v2137_v21  ;;  %1461 = vadd.xlane.f32.xlu1 %v1460_v17  ;;  %v1457_v6 = vsel %vm1399_vm5, %v4340_v61, 0.0 }
 0x2dc   : > { %1458 = vadd.xlane.f32.xlu0 %v1457_v6  ;;  %v2150_v28 = vsub.f32 %v4287_v37, %v2134_v62 }
 0x2dd   : > { %v4347_v9 = vpop.eup %3817  ;;  %v2163_v10 = vmul.f32 1.442695, %v2151_v0 }
 0x2de   : > { %v2143_v11 = vpop.xlane.xlu1 %2142  ;;  %v1466_v15 = vsel %vm1399_vm5, %v4347_v9, 0.0  ;;  %v4351_v16 = vpop.eup %3819 }
 0x2df   : > { %v2140_v14 = vpop.xlane.xlu0 %2139  ;;  %3825 = vpow2.f32 %v2163_v10  ;;  %v2153_v18 = vsub.f32 %v4289_v41, %v2143_v11  ;;  %1467 = vadd.xlane.f32.xlu1 %v1466_v15  ;;  %v2171_v55 = vsel %vm2122_vm6, %v4351_v16, 0.0  ;;  %v2148_v41 = vsub.f32 %v4281_v29, %v2128_v43 }
 0x2e0   : > { %v2152_v56 = vsub.f32 %v4295_v52, %v2140_v14 }
 0x2e1   : > { %v2167_v32 = vmul.f32 1.442695, %v2153_v18  ;;  %v4354_v19 = vpop.eup %3821  ;;  %v2157_v26 = vmul.f32 1.442695, %v2148_v41 }
 0x2e2   : > { %v2269_v20 = vpop.permute.xlu1 %2268  ;;  %v4358_v22 = vpop.eup %3823  ;;  %v1463_v23 = vsel %vm1399_vm5, %v4354_v19, 0.0  ;;  %v2165_v37 = vmul.f32 1.442695, %v2152_v56 }
 0x2e3   : > { %v2146_v47 = vpop.xlane.xlu0 %2145  ;;  %3827 = vpow2.f32 %v2167_v32  ;;  %2172 = vadd.xlane.f32.xlu1 %v2171_v55  ;;  %3732 = vmatpush3.msra.mxu1 %v2269_v20  ;;  %v2177_v51 = vsel %vm2122_vm6, %v4358_v22, 0.0  ;;  %v4410_v32 = vsub.s32 0, %v4145_v12 }
 0x2e4   : > { %1464 = vadd.xlane.f32.xlu0 %v1463_v23  ;;  %3741 = vmatprep.subr.mxu1 %v3896_v27  ;;  %v2154_v33 = vsub.f32 %v4301_v2, %v2146_v47 }
 0x2e6   : > { %v2169_v35 = vmul.f32 1.442695, %v2154_v33 }
 0x2e7   : > { %v1423_v59 = vpop.xlane.xlu0 %1422  ;;  %2178 = vadd.xlane.f32.xlu1 %v2177_v51 }
 0x2e8   : > { %v1431_v36 = vsub.f32 %v4303_v8, %v1423_v59  ;;  %v2161_v8 = vmul.f32 1.442695, %v2150_v28 }
 0x2e9   : > { %v4367_v25 = vpop.eup %3825 }
 0x2ea   : > { %v1446_v40 = vmul.f32 1.442695, %v1431_v36  ;;  %v2183_v30 = vsel %vm2122_vm6, %v4367_v25, 0.0 }
 0x2eb   : > { %v2346_v48 = vpop.permute.xlu0 %2345  ;;  %2184 = vadd.xlane.f32.xlu1 %v2183_v30 }
 0x2ec   : > { %3829 = vpow2.f32 %v1446_v40  ;;  %3737 = vmatpush3.msra.mxu0 %v2346_v48 }
 0x2ed   : > { %3746 = vmatprep.subr.mxu0 %v3896_v27  ;;  %v4373_v29 = vpop.eup %3827  ;;  %3831 = vpow2.f32 %v2157_v26 }
 0x2ee   : > { %v2189_v4 = vsel %vm2122_vm6, %v4373_v29, 0.0  ;;  %3833 = vpow2.f32 %v2161_v8 }
 0x2ef   : > { %2190 = vadd.xlane.f32.xlu1 %v2189_v4  ;;  %3835 = vpow2.f32 %v2165_v37 }
 0x2f0   : > { %3837 = vpow2.f32 %v2169_v35 }
 0x2f6   : > { %v4379_v34 = vpop.eup %3829 }
 0x2f7   : > { %v1469_v38 = vsel %vm1399_vm5, %v4379_v34, 0.0  ;;  %v4383_v39 = vpop.eup %3831 }
 0x2f8   : > { %1470 = vadd.xlane.f32.xlu0 %v1469_v38  ;;  %v2174_v52 = vsel %vm2122_vm6, %v4383_v39, 0.0  ;;  %v4387_v13 = vpop.eup %3833 }
 0x2f9   : > { %v2180_v2 = vsel %vm2122_vm6, %v4387_v13, 0.0  ;;  %v4391_v42 = vpop.eup %3835 }
 0x2fa   : > { %v2186_v43 = vsel %vm2122_vm6, %v4391_v42, 0.0  ;;  %v4397_v44 = vpop.eup %3837 }
 0x2fb   : > { %v2192_v21 = vsel %vm2122_vm6, %v4397_v44, 0.0 }
 0x2fc   : > { %2175 = vadd.xlane.f32.xlu0 %v2174_v52 }
 0x300   : > { %2181 = vadd.xlane.f32.xlu0 %v2180_v2  ;;  %2653 = vrot.lane.b32.xlu1 %v4132_v1, %s3898_s23  ;;  %v2423_v1 = vpop.permute.xlu1 %2422 }
 0x304   : > { %2187 = vadd.xlane.f32.xlu0 %v2186_v43  ;;  %2807 = vrot.lane.b32.xlu1 %v4140_v5, %s3898_s23  ;;  %v4407_v62 = vpop.permute.xlu1 %2499 }
 0x308   : > { %2193 = vadd.xlane.f32.xlu0 %v2192_v21 }
 0x31e   : > { %2576 = vrot.lane.b32.xlu0 %v4125_v63, %s3898_s23 }
 0x322   : > { %2730 = vrot.lane.b32.xlu0 %v4136_v3, %s3898_s23 }
 0x35c   : > { %v1450_v17 = vpop.xlane.xlu1 %1449 }
 0x35d   : > { %3839 = vrcp.f32 %v1450_v17 }
 0x360   : > { %v1453_v14 = vpop.xlane.xlu0 %1452 }
 0x364   : > { %v1456_v0 = vpop.xlane.xlu1 %1455 }
 0x367   : > { %v3840_v15 = vpop.eup %3839 }
 0x368   : > { %v1462_v6 = vpop.xlane.xlu1 %1461  ;;  %v1473_v3 = vmul.f32 %v3840_v15, %v4322_v24 }
 0x369   : > { %v1459_v20 = vpop.xlane.xlu0 %1458 }
 0x36a   : > { %v2219_v59 = vmul.f32 0.5, %v1473_v3 }
 0x36c   : > { %v1468_v10 = vpop.xlane.xlu1 %1467 }
 0x370   : > { %v2173_v11 = vpop.xlane.xlu1 %2172 }
 0x371   : > { %3841 = vrcp.f32 %v2173_v11  ;;  %v1465_v36 = vpop.xlane.xlu0 %1464 }
 0x372   : > { %3843 = vrcp.f32 %v1456_v0 }
 0x374   : > { %v2179_v5 = vpop.xlane.xlu1 %2178 }
 0x375   : > { %3845 = vrcp.f32 %v2179_v5 }
 0x378   : > { %v2185_v18 = vpop.xlane.xlu1 %2184 }
 0x379   : > { %3847 = vrcp.f32 %v2185_v18 }
 0x37b   : > { %v3842_v63 = vpop.eup %3841 }
 0x37c   : > { %v2196_v47 = vmul.f32 %v3842_v63, %v4351_v16  ;;  %v3844_v55 = vpop.eup %3843  ;;  %v2191_v28 = vpop.xlane.xlu1 %2190 }
 0x37d   : > { %v1477_v51 = vmul.f32 %v3844_v55, %v4334_v7  ;;  %3849 = vrcp.f32 %v2191_v28 }
 0x37e   : > { %v2211_v23 = vmul.f32 0.5, %v2196_v47  ;;  %3851 = vrcp.f32 %v1462_v6 }
 0x37f   : > { %v3846_v41 = vpop.eup %3845  ;;  %v2221_v24 = vmul.f32 0.5, %v1477_v51  ;;  %3853 = vrcp.f32 %v1453_v14 }
 0x380   : > { %v2200_v26 = vmul.f32 %v3846_v41, %v4358_v22  ;;  %v2230_v40 = vrot.slane %v2211_v23, %v4410_v32  ;;  %3855 = vrcp.f32 %v1468_v10 }
 0x382   : > { %v2213_v48 = vmul.f32 0.5, %v2200_v26  ;;  %v2259_v30 = vadd.f32 %v2230_v40, %v2219_v59 }
 0x383   : > { %v3848_v56 = vpop.eup %3847 }
 0x384   : > { %3734 = vmatmul.mubr.msk.f32.vlgmr.msra.gmra.mrb[28].mxu1 %vm1399_vm5, %v2259_v30  ;;  %v2238_v8 = vrot.slane %v2213_v48, %v4410_v32  ;;  %v2204_v4 = vmul.f32 %v3848_v56, %v4367_v25  ;;  %v2654_v48 = vpop.permute.xlu1 %2653 }
 0x385   : > { %v1471_v16 = vpop.xlane.xlu0 %1470  ;;  %3742 = vmatpush3.msra.mxu1 %v2423_v1  ;;  %3743 = vmatprep.mubr.msk.f32.mxu1 %vm3897_vm2, %v3896_v27 }
 0x386   : > { %v2261_v7 = vadd.f32 %v2238_v8, %v2221_v24  ;;  %3751 = vmatprep.subr.mxu1 %v3896_v27  ;;  %v2215_v52 = vmul.f32 0.5, %v2204_v4 }
 0x387   : > { %v3850_v33 = vpop.eup %3849 }
 0x388   : > { %3744 = vmatmul.mubr.msk.f32.vlgmr.msra.gmra.mrb[30].mxu1 %vm1399_vm5, %v2261_v7  ;;  %v3852_v35 = vpop.eup %3851  ;;  %v2208_v2 = vmul.f32 %v3850_v33, %v4373_v29  ;;  %v2246_v5 = vrot.slane %v2215_v52, %v4410_v32  ;;  %v2808_v56 = vpop.permute.xlu1 %2807 }
 0x389   : > { %v2176_v22 = vpop.xlane.xlu0 %2175  ;;  %3753 = vmatprep.mubr.msk.f32.mxu1 %vm3897_vm2, %v3896_v27  ;;  %v3854_v38 = vpop.eup %3853  ;;  %v1481_v1 = vmul.f32 %v3852_v35, %v4338_v60 }
 0x38a   : > { %3857 = vrcp.f32 %v2176_v22  ;;  %v3856_v21 = vpop.eup %3855  ;;  %v1475_v0 = vmul.f32 %v3854_v38, %v4328_v31  ;;  %v2217_v25 = vmul.f32 0.5, %v2208_v2 }
 0x38b   : > { %3859 = vrcp.f32 %v1459_v20  ;;  %v2223_v14 = vmul.f32 0.5, %v1481_v1  ;;  %v1485_v29 = vmul.f32 %v3856_v21, %v4347_v9 }
 0x38c   : > { %v2220_v63 = vmul.f32 0.5, %v1475_v0 }
 0x38d   : > { %v2182_v37 = vpop.xlane.xlu0 %2181  ;;  %v2263_v20 = vadd.f32 %v2246_v5, %v2223_v14  ;;  %v2225_v23 = vmul.f32 0.5, %v1485_v29 }
 0x38e   : > { %3861 = vrcp.f32 %v2182_v37 }
 0x38f   : > { %3863 = vrcp.f32 %v1465_v36 }
 0x391   : > { %v2188_v43 = vpop.xlane.xlu0 %2187 }
 0x392   : > { %3865 = vrcp.f32 %v2188_v43 }
 0x393   : > { %3867 = vrcp.f32 %v1471_v16 }
 0x394   : > { %v3858_v17 = vpop.eup %3857 }
 0x395   : > { %v3860_v6 = vpop.eup %3859  ;;  %v2198_v10 = vmul.f32 %v3858_v17, %v4383_v39  ;;  %v2194_v11 = vpop.xlane.xlu0 %2193  ;;  %v2254_v39 = vrot.slane %v2217_v25, %v4410_v32 }
 0x396   : > { %3869 = vrcp.f32 %v2194_v11  ;;  %v1479_v60 = vmul.f32 %v3860_v6, %v4340_v61 }
 0x397   : > { %v2212_v15 = vmul.f32 0.5, %v2198_v10  ;;  %v2265_v26 = vadd.f32 %v2254_v39, %v2225_v23 }
 0x398   : > { %v3862_v18 = vpop.eup %3861  ;;  %v2222_v51 = vmul.f32 0.5, %v1479_v60 }
 0x399   : > { %v2202_v3 = vmul.f32 %v3862_v18, %v4387_v13  ;;  %v2577_v31 = vpop.permute.xlu0 %2576  ;;  %v2234_v47 = vrot.slane %v2212_v15, %v4410_v32  ;;  %v3864_v55 = vpop.eup %3863 }
 0x39a   : > { %3752 = vmatpush3.msra.mxu1 %v2577_v31  ;;  %v1483_v61 = vmul.f32 %v3864_v55, %v4354_v19 }
 0x39b   : > { %v2214_v41 = vmul.f32 0.5, %v2202_v3  ;;  %3754 = vmatmul.mubr.msk.f32.vlgmr.msra.gmra.mrb[32].mxu1 %vm1399_vm5, %v2263_v20  ;;  %v2260_v9 = vadd.f32 %v2234_v47, %v2220_v63  ;;  %3761 = vmatprep.subr.mxu1 %v3896_v27 }
 0x39c   : > { %v3866_v59 = vpop.eup %3865  ;;  %3763 = vmatprep.mubr.msk.f32.mxu1 %vm3897_vm2, %v3896_v27 }
 0x39d   : > { %v2206_v13 = vmul.f32 %v3866_v59, %v4391_v42  ;;  %3739 = vmatmul.mubr.msk.f32.vlgmr.msra.gmra.mrb[30].mxu0 %vm1399_vm5, %v2260_v9  ;;  %v2731_v36 = vpop.permute.xlu0 %2730  ;;  %v2242_v28 = vrot.slane %v2214_v41, %v4410_v32  ;;  %v3868_v40 = vpop.eup %3867  ;;  %v2224_v42 = vmul.f32 0.5, %v1483_v61 }
 0x39e   : > { %3747 = vmatpush3.msra.mxu0 %v4407_v62  ;;  %3762 = vmatpush3.msra.mxu1 %v2731_v36  ;;  %v1487_v16 = vmul.f32 %v3868_v40, %v4379_v34 }
 0x39f   : > { %v2216_v30 = vmul.f32 0.5, %v2206_v13  ;;  %3764 = vmatmul.mubr.msk.f32.vlgmr.msra.gmra.mrb[34].mxu1 %vm1399_vm5, %v2265_v26  ;;  %3748 = vmatprep.mubr.msk.f32.mxu0 %vm3897_vm2, %v3896_v27  ;;  %v2262_v19 = vadd.f32 %v2242_v28, %v2222_v51 }
 0x3a0   : > { %v3870_v24 = vpop.eup %3869  ;;  %3756 = vmatprep.subr.mxu0 %v3896_v27  ;;  %v2226_v4 = vmul.f32 0.5, %v1487_v16 }
 0x3a1   : > { %v2210_v8 = vmul.f32 %v3870_v24, %v4397_v44  ;;  %3749 = vmatmul.mubr.msk.f32.vlgmr.msra.gmra.mrb[32].mxu0 %vm1399_vm5, %v2262_v19  ;;  %v2250_v62 = vrot.slane %v2216_v30, %v4410_v32 }
 0x3a2   : > { %3757 = vmatpush3.msra.mxu0 %v2654_v48  ;;  %3758 = vmatprep.mubr.msk.f32.mxu0 %vm3897_vm2, %v3896_v27 }
 0x3a3   : > { %v2218_v7 = vmul.f32 0.5, %v2210_v8  ;;  %3766 = vmatprep.subr.mxu0 %v3896_v27  ;;  %v2264_v22 = vadd.f32 %v2250_v62, %v2224_v42 }
 0x3a5   : > { %3759 = vmatmul.mubr.msk.f32.vlgmr.msra.gmra.mrb[34].mxu0 %vm1399_vm5, %v2264_v22  ;;  %v2258_v34 = vrot.slane %v2218_v7, %v4410_v32 }
 0x3a6   : > { %3767 = vmatpush3.msra.mxu0 %v2808_v56  ;;  %3768 = vmatprep.mubr.msk.f32.mxu0 %vm3897_vm2, %v3896_v27 }
 0x3a7   : > { %v2266_v44 = vadd.f32 %v2258_v34, %v2226_v4 }
 0x3a9   : > { %3769 = vmatmul.mubr.msk.f32.vlgmr.msra.gmra.mrb[36].mxu0 %vm1399_vm5, %v2266_v44 }
 0x457   : > { %v2340_v37 = vpop.f32.mrb[28].mxu1 }
 0x458   : > { %v2341_v33 = vadd.f32 %v2340_v37, %v4076_v46  ;;  %v3735_v35 = vpop.f32.mrb[29].mxu1 }
 0x45a   : > { %v2883_v38 = vmax.f32 %v2341_v33, 0.0 }
 0x45b   : > { %v2494_v52 = vpop.f32.mrb[30].mxu1 }
 0x45c   : > { %v2495_v2 = vadd.f32 %v2494_v52, %v4088_v50  ;;  %v3745_v43 = vpop.f32.mrb[31].mxu1  ;;  %v2891_v21 = vsel %vm769_vm4, %v2883_v38, 0.0 }
 0x45d   : > { %2892 = vadd.xlane.f32.xlu0 %v2891_v21 }
 0x45e   : > { %v2885_v32 = vmax.f32 %v2495_v2, 0.0 }
 0x460   : > { %v2897_v1 = vsel %vm769_vm4, %v2885_v32, 0.0 }
 0x461   : > { %2898 = vadd.xlane.f32.xlu0 %v2897_v1 }
 0x46e   : > { %v2648_v27 = vpop.f32.mrb[32].mxu1 }
 0x46f   : > { %v2649_v17 = vadd.f32 %v2648_v27, %v4101_v54  ;;  %v3755_v0 = vpop.f32.mrb[33].mxu1 }
 0x470   : > { %v2417_v6 = vpop.f32.mrb[30].mxu0 }
 0x471   : > { %v2418_v46 = vadd.f32 %v4074_v45, %v2417_v6  ;;  %v3740_v25 = vpop.f32.mrb[31].mxu0  ;;  %v2887_v29 = vmax.f32 %v2649_v17, 0.0 }
 0x472   : > { %v2802_v10 = vpop.f32.mrb[34].mxu1 }
 0x473   : > { %v2884_v11 = vmax.f32 %v2418_v46, 0.0  ;;  %v2803_v50 = vadd.f32 %v2802_v10, %v4113_v58  ;;  %v3765_v5 = vpop.f32.mrb[35].mxu1  ;;  %v2903_v20 = vsel %vm769_vm4, %v2887_v29, 0.0 }
 0x474   : > { %v2571_v14 = vpop.f32.mrb[32].mxu0 }
 0x475   : > { %v2572_v15 = vadd.f32 %v4084_v49, %v2571_v14  ;;  %v3750_v18 = vpop.f32.mrb[33].mxu0  ;;  %v2894_v63 = vsel %vm769_vm4, %v2884_v11, 0.0  ;;  %v2889_v3 = vmax.f32 %v2803_v50, 0.0 }
 0x476   : > { %2895 = vadd.xlane.f32.xlu1 %v2894_v63 }
 0x477   : > { %v2886_v60 = vmax.f32 %v2572_v15, 0.0  ;;  %v2909_v23 = vsel %vm769_vm4, %v2889_v3, 0.0 }
 0x478   : > { %v2725_v54 = vpop.f32.mrb[34].mxu0 }
 0x479   : > { %v2726_v31 = vadd.f32 %v4099_v53, %v2725_v54  ;;  %v3760_v45 = vpop.f32.mrb[35].mxu0  ;;  %v2900_v47 = vsel %vm769_vm4, %v2886_v60, 0.0 }
 0x47a   : > { %2904 = vadd.xlane.f32.xlu1 %v2903_v20  ;;  %2901 = vadd.xlane.f32.xlu0 %v2900_v47 }
 0x47b   : > { %v2888_v58 = vmax.f32 %v2726_v31, 0.0 }
 0x47c   : > { %v2879_v39 = vpop.f32.mrb[36].mxu0 }
 0x47d   : > { %v2880_v49 = vadd.f32 %v4111_v57, %v2879_v39  ;;  %v3770_v55 = vpop.f32.mrb[37].mxu0  ;;  %v2906_v41 = vsel %vm769_vm4, %v2888_v58, 0.0 }
 0x47e   : > { %2910 = vadd.xlane.f32.xlu1 %v2909_v23  ;;  %2907 = vadd.xlane.f32.xlu0 %v2906_v41 }
 0x47f   : > { %v2890_v9 = vmax.f32 %v2880_v49, 0.0 }
 0x481   : > { %v2912_v53 = vsel %vm769_vm4, %v2890_v9, 0.0 }
 0x482   : > { %2913 = vadd.xlane.f32.xlu0 %v2912_v53 }
 0x4ea   : > { %v2893_v59 = vpop.xlane.xlu0 %2892 }
 0x4eb   : > { %v2916_v51 = vmul.f32 0.03125, %v2893_v59 }
 0x4ed   : > { %v4477_v61 = vsub.f32 %v2883_v38, %v2916_v51 }
 0x4ee   : > { %v2899_v13 = vpop.xlane.xlu0 %2898 }
 0x4ef   : > { %v2918_v36 = vmul.f32 0.03125, %v2899_v13  ;;  %v2932_v57 = vmul.f32 %v4477_v61, %v4477_v61 }
 0x4f1   : > { %v4481_v26 = vsub.f32 %v2885_v32, %v2918_v36  ;;  %v2940_v28 = vsel %vm769_vm4, %v2932_v57, 0.0 }
 0x4f2   : > { %2941 = vadd.xlane.f32.xlu1 %v2940_v28  ;;  %v3488_v28 = vld [vmem:[%s4586_s6] ss:$0 sm:$0xff] }
 0x4f3   : > { %v2934_v40 = vmul.f32 %v4481_v26, %v4481_v26 }
 0x4f5   : > { %v2946_v48 = vsel %vm769_vm4, %v2934_v40, 0.0 }
 0x4f6   : > { %2947 = vadd.xlane.f32.xlu1 %v2946_v48  ;;  %v3900_v48 = vmov 1983009808  }
 0x503   : > { %v2896_v30 = vpop.xlane.xlu1 %2895 }
 0x504   : > { %v2917_v19 = vmul.f32 0.03125, %v2896_v30  ;;  %v3025_v30 = vunpack.c.l.s4 %v3900_v48 }
 0x506   : > { %v4487_v24 = vsub.f32 %v2884_v11, %v2917_v19 }
 0x507   : > { %v2905_v42 = vpop.xlane.xlu1 %2904  ;;  %v2902_v16 = vpop.xlane.xlu0 %2901 }
 0x508   : > { %v2920_v8 = vmul.f32 0.03125, %v2905_v42  ;;  %v2919_v62 = vmul.f32 0.03125, %v2902_v16  ;;  %v2933_v7 = vmul.f32 %v4487_v24, %v4487_v24 }
 0x50a   : > { %v4491_v22 = vsub.f32 %v2887_v29, %v2920_v8  ;;  %v4493_v56 = vsub.f32 %v2886_v60, %v2919_v62  ;;  %v2943_v4 = vsel %vm769_vm4, %v2933_v7, 0.0  ;;  %v3489_v8 = vld [vmem:[%s4586_s6 + $0x1] ss:$0 sm:$0xff]  ;;  %v3026_v62 = vunpack.c.0.s8 %v3025_v30 }
 0x50b   : > { %v2911_v34 = vpop.xlane.xlu1 %2910  ;;  %v2908_v44 = vpop.xlane.xlu0 %2907  ;;  %2944 = vadd.xlane.f32.xlu0 %v2943_v4  ;;  %v3901_v7 = vmov 1934713408  }
 0x50c   : > { %v2922_v37 = vmul.f32 0.03125, %v2911_v34  ;;  %v2921_v33 = vmul.f32 0.03125, %v2908_v44  ;;  %v2936_v35 = vmul.f32 %v4491_v22, %v4491_v22  ;;  %v2935_v38 = vmul.f32 %v4493_v56, %v4493_v56 }
 0x50d   : > { %v3089_v4 = vunpack.c.l.s4 %v3901_v7 }
 0x50e   : > { %v4500_v52 = vsub.f32 %v2889_v3, %v2922_v37  ;;  %v4502_v2 = vsub.f32 %v2888_v58, %v2921_v33  ;;  %v2952_v43 = vsel %vm769_vm4, %v2936_v35, 0.0  ;;  %v2949_v21 = vsel %vm769_vm4, %v2935_v38, 0.0 }
 0x50f   : > { %2953 = vadd.xlane.f32.xlu1 %v2952_v43  ;;  %2950 = vadd.xlane.f32.xlu0 %v2949_v21  ;;  %v2914_v32 = vpop.xlane.xlu0 %2913  ;;  %v4529_v21 = vsub.s32 %v3026_v62, %v4145_v12 }
 0x510   : > { %v2923_v1 = vmul.f32 0.03125, %v2914_v32  ;;  %v2938_v27 = vmul.f32 %v4500_v52, %v4500_v52  ;;  %v2937_v17 = vmul.f32 %v4502_v2, %v4502_v2  ;;  %v3090_v32 = vunpack.c.0.s8 %v3089_v4 }
 0x512   : > { %v4510_v0 = vsub.f32 %v2890_v9, %v2923_v1  ;;  %v2958_v6 = vsel %vm769_vm4, %v2938_v27, 0.0  ;;  %v2955_v46 = vsel %vm769_vm4, %v2937_v17, 0.0 }
 0x513   : > { %2959 = vadd.xlane.f32.xlu1 %v2958_v6  ;;  %2956 = vadd.xlane.f32.xlu0 %v2955_v46 }
 0x514   : > { %v2939_v25 = vmul.f32 %v4510_v0, %v4510_v0 }
 0x516   : > { %v2961_v10 = vsel %vm769_vm4, %v2939_v25, 0.0 }
 0x517   : > { %2962 = vadd.xlane.f32.xlu0 %v2961_v10 }
 0x57f   : > { %v2942_v11 = vpop.xlane.xlu1 %2941 }
 0x580   : > { %v2964_v14 = vmul.f32 0.03125, %v2942_v11 }
 0x582   : > { %v2972_v15 = vadd.f32 1e-05, %v2964_v14 }
 0x583   : > { %v2948_v50 = vpop.xlane.xlu1 %2947 }
 0x584   : > { %v2966_v5 = vmul.f32 0.03125, %v2948_v50 }
 0x586   : > { %v2974_v29 = vadd.f32 1e-05, %v2966_v5  ;;  %v4534_v5 = vsub.s32 %v3090_v32, %v4145_v12 }
 0x588   : > { %3871 = vrsqrt.f32 %v2974_v29 }
 0x589   : > { %3873 = vrsqrt.f32 %v2972_v15 }
 0x592   : > { %v3872_v49 = vpop.eup %3871 }
 0x593   : > { %v3874_v41 = vpop.eup %3873  ;;  %v2990_v59 = vmul.f32 %v3872_v49, %v4481_v26 }
 0x594   : > { %v2988_v36 = vmul.f32 %v3874_v41, %v4477_v61 }
 0x595   : > { %v3003_v19 = vmul.f32 %v3488_v28, %v2990_v59 }
 0x596   : > { %v3001_v16 = vmul.f32 %v3488_v28, %v2988_v36 }
 0x597   : > { %v3016_v34 = vadd.f32 %v3489_v8, %v3003_v19 }
 0x598   : > { %v2945_v18 = vpop.xlane.xlu0 %2944  ;;  %v3014_v33 = vadd.f32 %v3489_v8, %v3001_v16 }
 0x599   : > { %v2965_v63 = vmul.f32 0.03125, %v2945_v18 }
 0x59a   : > { %v3022_v1 = vcombine.low %v3014_v33, %v3016_v34  ;;  %v3023_v17 = vcombine.high %v3014_v33, %v3016_v34 }
 0x59b   : > { %v2973_v60 = vadd.f32 1e-05, %v2965_v63 }
 0x59c   : > { %v2954_v54 = vpop.xlane.xlu1 %2953  ;;  %v2951_v3 = vpop.xlane.xlu0 %2950  ;;  %v3030_v18 = vrot.slane %v3022_v1, %v4529_v21 }
 0x59d   : > { %3875 = vrsqrt.f32 %v2973_v60  ;;  %v2968_v31 = vmul.f32 0.03125, %v2954_v54  ;;  %v2967_v45 = vmul.f32 0.03125, %v2951_v3 }
 0x59f   : > { %v2976_v20 = vadd.f32 1e-05, %v2968_v31  ;;  %v2975_v47 = vadd.f32 1e-05, %v2967_v45 }
 0x5a0   : > { %v2960_v58 = vpop.xlane.xlu1 %2959  ;;  %v2957_v39 = vpop.xlane.xlu0 %2956 }
 0x5a1   : > { %3877 = vrsqrt.f32 %v2976_v20  ;;  %v2970_v55 = vmul.f32 0.03125, %v2960_v58  ;;  %v2969_v23 = vmul.f32 0.03125, %v2957_v39 }
 0x5a2   : > { %3879 = vrsqrt.f32 %v2975_v47 }
 0x5a3   : > { %v2978_v9 = vadd.f32 1e-05, %v2970_v55  ;;  %v2977_v53 = vadd.f32 1e-05, %v2969_v23 }
 0x5a4   : > { %v2963_v51 = vpop.xlane.xlu0 %2962 }
 0x5a5   : > { %3881 = vrsqrt.f32 %v2978_v9  ;;  %v2971_v13 = vmul.f32 0.03125, %v2963_v51 }
 0x5a6   : > { %3883 = vrsqrt.f32 %v2977_v53 }
 0x5a7   : > { %v3876_v57 = vpop.eup %3875  ;;  %v2979_v40 = vadd.f32 1e-05, %v2971_v13 }
 0x5a8   : > { %v2989_v42 = vmul.f32 %v3876_v57, %v4487_v24 }
 0x5a9   : > { %3885 = vrsqrt.f32 %v2979_v40 }
 0x5aa   : > { %v3002_v44 = vmul.f32 %v3488_v28, %v2989_v42 }
 0x5ab   : > { %v3878_v26 = vpop.eup %3877 }
 0x5ac   : > { %v3880_v61 = vpop.eup %3879  ;;  %v2992_v35 = vmul.f32 %v3878_v26, %v4491_v22  ;;  %v3015_v6 = vadd.f32 %v3489_v8, %v3002_v44 }
 0x5ad   : > { %v2991_v37 = vmul.f32 %v3880_v61, %v4493_v56 }
 0x5ae   : > { %v3005_v10 = vmul.f32 %v3488_v28, %v2992_v35 }
 0x5af   : > { %v3882_v38 = vpop.eup %3881  ;;  %v3004_v24 = vmul.f32 %v3488_v28, %v2991_v37 }
 0x5b0   : > { %v3884_v43 = vpop.eup %3883  ;;  %v2994_v27 = vmul.f32 %v3882_v38, %v4500_v52  ;;  %v3037_v52 = vrot.slane %v3023_v17, %v4529_v21  ;;  %v3018_v60 = vadd.f32 %v3489_v8, %v3005_v10 }
 0x5b1   : > { %v3017_v46 = vadd.f32 %v3489_v8, %v3004_v24  ;;  %v2993_v25 = vmul.f32 %v3884_v43, %v4502_v2 }
 0x5b2   : > { %v3007_v56 = vmul.f32 %v3488_v28, %v2994_v27 }
 0x5b3   : > { %v3886_v11 = vpop.eup %3885  ;;  %v3038_v50 = vcombine.low %v3015_v6, %v3017_v46  ;;  %v3039_v22 = vcombine.high %v3015_v6, %v3017_v46  ;;  %v3006_v29 = vmul.f32 %v3488_v28, %v2993_v25 }
 0x5b4   : > { %v3020_v14 = vadd.f32 %v3489_v8, %v3007_v56  ;;  %v2995_v15 = vmul.f32 %v3886_v11, %v4510_v0 }
 0x5b5   : > { %v3046_v63 = vrot.slane %v3038_v50, %v4529_v21  ;;  %v3053_v2 = vrot.slane %v3039_v22, %v4529_v21  ;;  %v3019_v58 = vadd.f32 %v3489_v8, %v3006_v29 }
 0x5b6   : > { %v3008_v54 = vmul.f32 %v3488_v28, %v2995_v15  ;;  %v3054_v12 = vcombine.low %v3018_v60, %v3020_v14  ;;  %v3055_v47 = vcombine.high %v3018_v60, %v3020_v14 }
 0x5b7   : > { %v3086_v3 = vcombine.low %v3030_v18, %v3046_v63  ;;  %v3087_v31 = vcombine.high %v3030_v18, %v3046_v63  ;;  %v3102_v45 = vcombine.low %v3037_v52, %v3053_v2  ;;  %v3103_v20 = vcombine.high %v3037_v52, %v3053_v2 }
 0x5b8   : > { %v3021_v39 = vadd.f32 %v3489_v8, %v3008_v54  ;;  %v3062_v36 = vrot.slane %v3054_v12, %v4529_v21  ;;  %v3069_v57 = vrot.slane %v3055_v47, %v4529_v21 }
 0x5b9   : > { %v3094_v0 = vrot.slane %v3086_v3, %v4534_v5  ;;  %v3101_v49 = vrot.slane %v3087_v31, %v4534_v5  ;;  %v3110_v55 = vrot.slane %v3102_v45, %v4534_v5  ;;  %v3117_v23 = vrot.slane %v3103_v20, %v4534_v5 }
 0x5ba   : > { %v3070_v41 = vcombine.low %v3019_v58, %v3021_v39  ;;  %v3071_v9 = vcombine.high %v3019_v58, %v3021_v39 }
 0x5bb   : > { %v3490_v53 = vcombine.low %v3094_v0, %v3101_v49  ;;  %v3492_v59 = vcombine.high %v3094_v0, %v3101_v49  ;;  %v3494_v51 = vcombine.low %v3110_v55, %v3117_v23  ;;  %v3496_v13 = vcombine.high %v3110_v55, %v3117_v23 }
 0x5bc   : > { %v3078_v28 = vrot.slane %v3070_v41, %v4529_v21  ;;  %v3085_v40 = vrot.slane %v3071_v9, %v4529_v21 }
 0x5bd   : > { %v3166_v48 = vrot.slane %v3490_v53, %v4529_v21  ;;  %v3182_v30 = vrot.slane %v3492_v59, %v4529_v21  ;;  %v3198_v19 = vrot.slane %v3494_v51, %v4529_v21  ;;  %v3214_v42 = vrot.slane %v3496_v13, %v4529_v21 }
 0x5be   : > { %v3118_v16 = vcombine.low %v3062_v36, %v3078_v28  ;;  %v3119_v26 = vcombine.high %v3062_v36, %v3078_v28  ;;  %v3134_v8 = vcombine.low %v3069_v57, %v3085_v40  ;;  %v3135_v61 = vcombine.high %v3069_v57, %v3085_v40 }
 0x5bf   : > { %v3223_v62 = vcombine.high %v3166_v48, %v3182_v30  ;;  %v3255_v7 = vcombine.high %v3198_v19, %v3214_v42  ;;  %v3222_v4 = vcombine.low %v3166_v48, %v3182_v30  ;;  %v3254_v34 = vcombine.low %v3198_v19, %v3214_v42 }
 0x5c0   : > { %v3126_v44 = vrot.slane %v3118_v16, %v4534_v5  ;;  %v3133_v37 = vrot.slane %v3119_v26, %v4534_v5  ;;  %v3142_v33 = vrot.slane %v3134_v8, %v4534_v5  ;;  %v3149_v35 = vrot.slane %v3135_v61, %v4534_v5 }
 0x5c1   : > { %v3237_v38 = vrot.slane %v3223_v62, %v4534_v5  ;;  %v3269_v24 = vrot.slane %v3255_v7, %v4534_v5  ;;  %v3230_v43 = vrot.slane %v3222_v4, %v4534_v5  ;;  %v3262_v32 = vrot.slane %v3254_v34, %v4534_v5 }
 0x5c2   : > { %v3491_v1 = vcombine.low %v3126_v44, %v3133_v37  ;;  %v3493_v27 = vcombine.high %v3126_v44, %v3133_v37  ;;  %v3495_v17 = vcombine.low %v3142_v33, %v3149_v35  ;;  %v3497_v6 = vcombine.high %v3142_v33, %v3149_v35 }
 0x5c3   : > { %v3288_v46 = vcombine.low %v3237_v38, %v3269_v24  ;;  %v3287_v25 = vcombine.high %v3230_v43, %v3262_v32  ;;  %v3286_v10 = vcombine.low %v3230_v43, %v3262_v32  ;;  %v3289_v52 = vcombine.high %v3237_v38, %v3269_v24 }
 0x5c4   : > { %v3173_v56 = vrot.slane %v3491_v1, %v4529_v21  ;;  %v3189_v11 = vrot.slane %v3493_v27, %v4529_v21  ;;  %v3205_v50 = vrot.slane %v3495_v17, %v4529_v21  ;;  %v3221_v22 = vrot.slane %v3497_v6, %v4529_v21 }
 0x5c5   : > { %3299 = vrot.lane.b32.xlu0 %v3288_v46, %s3902_s30  ;;  %3295 = vrot.lane.b32.xlu1 %v3287_v25, %s3903_s8 }
 0x5c6   : > { %v3239_v14 = vcombine.high %v3173_v56, %v3189_v11  ;;  %v3271_v29 = vcombine.high %v3205_v50, %v3221_v22  ;;  %v3238_v15 = vcombine.low %v3173_v56, %v3189_v11  ;;  %v3270_v18 = vcombine.low %v3205_v50, %v3221_v22 }
 0x5c8   : > { %v3253_v63 = vrot.slane %v3239_v14, %v4534_v5  ;;  %v3285_v2 = vrot.slane %v3271_v29, %v4534_v5  ;;  %v3246_v60 = vrot.slane %v3238_v15, %v4534_v5  ;;  %v3278_v54 = vrot.slane %v3270_v18, %v4534_v5 }
 0x5c9   : > { %3303 = vrot.lane.b32.xlu1 %v3289_v52, %s3898_s23 }
 0x5ca   : > { %v3292_v21 = vcombine.low %v3253_v63, %v3285_v2  ;;  %v3291_v3 = vcombine.high %v3246_v60, %v3278_v54  ;;  %v3290_v31 = vcombine.low %v3246_v60, %v3278_v54  ;;  %v3293_v45 = vcombine.high %v3253_v63, %v3285_v2 }
 0x5cc   : > { %3311 = vrot.lane.b32.xlu0 %v3292_v21, %s3902_s30 }
 0x5cd   : > { %3307 = vrot.lane.b32.xlu1 %v3291_v3, %s3903_s8 }
 0x5d1   : > { %3315 = vrot.lane.b32.xlu1 %v3293_v45, %s3898_s23 }
 0x637   : > { %v3296_v20 = vpop.permute.xlu1 %3295  ;;  %v3300_v47 = vpop.permute.xlu0 %3299 }
 0x638   : > { %v3318_v12 = vsel %vm769_vm4, %v3286_v10, %v3296_v20 }
 0x639   : > { %v3320_v5 = vsel %vm3319_vm7, %v3318_v12, %v3300_v47 }
 0x63b   : > { %v3304_v58 = vpop.permute.xlu1 %3303 }
 0x63c   : > { %v3322_v39 = vsel %vm3321_vm8, %v3320_v5, %v3304_v58 }
 0x63d   : > { %3326 = vst [vmem:[%s319_s13] sm:$0xff] %v3322_v39 }
 0x63e   : > { %v3312_v55 = vpop.permute.xlu0 %3311 }
 0x63f   : > { %v3308_v0 = vpop.permute.xlu1 %3307 }
 0x640   : > { %v3323_v49 = vsel %vm769_vm4, %v3290_v31, %v3308_v0 }
 0x641   : > { %v3324_v23 = vsel %vm3319_vm7, %v3323_v49, %v3312_v55 }
 0x643   : > { %v3316_v41 = vpop.permute.xlu1 %3315 }
 0x644   : > { %v3325_v9 = vsel %vm3321_vm8, %v3324_v23, %v3316_v41 }
 0x645   : > { %3327 = vst [vmem:[%s319_s13 + $0x8] sm:$0xff] %v3325_v9 }
 0x646 PF: > { %s17_s24 = sadd.s32 1, %s3893_s24  }
 0x647   : > { %p14_p7 = scmp.ge.s32.totalorder %s17_s24, 4  }
 0x649   :  { %16 = sbr.rel (!%p14_p7) target bundleno = 1 (0x1), region = 84 }

</bundles_post_ra>
